<compile_context>
chip_gen: v6e
topology: v6e:2x2x1
jax: 0.10.0
libtpu: 0.0.40
codegen_flags: <defaults>
</compile_context>

<pallas_src>
import functools

import jax
import jax.numpy as jnp
from jax.experimental import pallas as pl
from jax.experimental.pallas import tpu as pltpu


# ------------------------------ fused kernel ------------------------------- #

def hgru_pass_kernel(x_ref, w_ref, b_ref, g_ref, beta_ref, wo_ref, bo_ref,
                     o_ref,
                     u_buf, lam_buf, og_buf, srev_buf, y_buf, st_ref,
                     *, expand_ratio):
    """One directional Hgru2 pass for a (N, Mblk, D) block, fully in VMEM.

    Scratch layouts use lane width e*D, with the per-group element d laid out
    d-major along lanes:  buf[n, m, d*D + j]  <->  (h, d, e') state with
    j = h*e + e'.
    """
    e = expand_ratio
    N, Mblk, D = x_ref.shape
    R = N * Mblk
    ED = e * D

    # ---- 1) gate projections: one wide stacked matmul over the whole block.
    x2 = x_ref[...].reshape(R, D)
    feat = jnp.dot(x2, w_ref[...], preferred_element_type=jnp.float32) + b_ref[...]

    inp_all = feat[:, :ED]                       # silu input, replicated per d
    inp_all = inp_all * jax.nn.sigmoid(inp_all)  # silu
    og_all = jax.nn.sigmoid(feat[:, ED:2 * ED])  # output gate, head-gathered
    lam_all = jax.nn.sigmoid(feat[:, 2 * ED:])   # lambda (lower_bound = 0)
    u_all = (1.0 - lam_all) * inp_all            # drive term

    u_buf[...] = u_all.reshape(N, Mblk, ED)
    lam_buf[...] = lam_all.reshape(N, Mblk, ED)
    og_buf[...] = og_all.reshape(N, Mblk, ED)

    unroll = True if N <= 16 else 8

    # ---- 2) reverse scan:  s_r[n] = lam[n] * s_r[n+1] + u[n]
    st_ref[...] = jnp.zeros_like(st_ref)

    def rev_body(t, carry):
        n = N - 1 - t
        s = lam_buf[n] * st_ref[...] + u_buf[n]
        st_ref[...] = s
        srev_buf[n] = s
        return carry

    jax.lax.fori_loop(0, N, rev_body, 0, unroll=unroll)

    # ---- 3) forward scan + output-gate contraction (sum over d).
    st_ref[...] = jnp.zeros_like(st_ref)

    def fwd_body(n, carry):
        s = lam_buf[n] * st_ref[...] + u_buf[n]
        st_ref[...] = s
        tot = (s + srev_buf[n]) * og_buf[n]       # (Mblk, e*D)
        y = tot[:, :D]
        for d in range(1, e):                     # static, e is tiny
            y = y + tot[:, d * D:(d + 1) * D]
        y_buf[n] = y
        return carry

    jax.lax.fori_loop(0, N, fwd_body, 0, unroll=unroll)

    # ---- 4) LayerNorm + out_proj, batched over the whole block.
    y = y_buf[...].reshape(R, D)
    mu = jnp.mean(y, axis=-1, keepdims=True)
    var = jnp.mean(jnp.square(y - mu), axis=-1, keepdims=True)
    yn = (y - mu) * jax.lax.rsqrt(var + 1e-5)
    yn = yn * g_ref[...] + beta_ref[...]
    out = jnp.dot(yn, wo_ref[...], preferred_element_type=jnp.float32) + bo_ref[...]
    o_ref[...] = out.reshape(N, Mblk, D).astype(o_ref.dtype)


# ----------------------------- pallas wrapper ------------------------------ #

def _pick_block(M, target=128):
    """Largest M-block <= target that divides M and is a multiple of 8."""
    if M <= target:
        return M
    mb = (target // 8) * 8
    while mb >= 8:
        if M % mb == 0:
            return mb
        mb -= 8
    return M


def hgru_compute(x_seq, kp):
    """One directional pass of Hgru2_2d_series.compute on (N, M, D)."""
    N, M, D = x_seq.shape
    e = kp["expand_ratio"]
    C = 3 * e * D
    f32 = jnp.float32
    # Block only the independent batch dim M; the whole scan axis N stays
    # resident in VMEM.  Mblk bounds the VMEM scratch footprint
    # (~ (4*e + 1) * N * Mblk * D * 4 bytes); shrink `target` for very long N
    # or very large D on v7x (64 MiB VMEM).
    Mblk = _pick_block(M)
    grid = (M // Mblk,)

    kernel = functools.partial(hgru_pass_kernel, expand_ratio=e)
    return pl.pallas_call(
        kernel,
        grid=grid,
        in_specs=[
            pl.BlockSpec((N, Mblk, D), lambda m: (0, m, 0)),   # x
            pl.BlockSpec((D, C), lambda m: (0, 0)),            # stacked in_proj W
            pl.BlockSpec((1, C), lambda m: (0, 0)),            # stacked in_proj b
            pl.BlockSpec((1, D), lambda m: (0, 0)),            # LN gamma
            pl.BlockSpec((1, D), lambda m: (0, 0)),            # LN beta
            pl.BlockSpec((D, D), lambda m: (0, 0)),            # out_proj W
            pl.BlockSpec((1, D), lambda m: (0, 0)),            # out_proj b
        ],
        out_specs=pl.BlockSpec((N, Mblk, D), lambda m: (0, m, 0)),
        out_shape=jax.ShapeDtypeStruct((N, M, D), f32),
        scratch_shapes=[
            pltpu.VMEM((N, Mblk, e * D), f32),   # u
            pltpu.VMEM((N, Mblk, e * D), f32),   # lambda
            pltpu.VMEM((N, Mblk, e * D), f32),   # output gate
            pltpu.VMEM((N, Mblk, e * D), f32),   # reverse-scan states
            pltpu.VMEM((N, Mblk, D), f32),       # pre-norm output
            pltpu.VMEM((Mblk, e * D), f32),      # scan carry (f32 state)
        ],
        compiler_params=pltpu.CompilerParams(
            dimension_semantics=("parallel",)),  # M blocks are independent
    )(x_seq, kp["w_stack"], kp["b_stack"], kp["gamma"], kp["beta"],
      kp["wout"], kp["bout"])


def hgru2_2d_forward(x, kp):
    """Full Hgru2_2d_series.forward: x is (H, W, B, D)."""
    H, W, B, D = x.shape
    y1 = hgru_compute(x.reshape(H, W * B, D), kp)                    # 'h (w b) d'
    y1 = y1.reshape(H, W, B, D).transpose(1, 0, 2, 3).reshape(W, H * B, D)
    y2 = hgru_compute(y1, kp)                                        # 'w (h b) d'
    return y2.reshape(W, H, B, D).transpose(1, 0, 2, 3)              # 'h w b d'


# ------------------------ parameters (glue / setup) ------------------------ #

def init_raw_params(key, D):
    """PyTorch-module parameter shapes, deterministic synthetic init."""
    k1, k2, k3, k4 = jax.random.split(key, 4)
    W_in = jax.random.normal(k1, (3 * D, D), jnp.float32) / jnp.sqrt(D)
    b_in = jax.random.normal(k2, (3 * D,), jnp.float32) * 0.02
    W_out = jax.random.normal(k3, (D, D), jnp.float32) / jnp.sqrt(D)
    b_out = jax.random.normal(k4, (D,), jnp.float32) * 0.02
    gamma = jnp.ones((D,), jnp.float32)          # LayerNorm weight
    beta = jnp.zeros((D,), jnp.float32)          # LayerNorm bias
    return dict(W_in=W_in, b_in=b_in, W_out=W_out, b_out=b_out,
                gamma=gamma, beta=beta)


def make_kernel_params(raw, D, e):
    """Build the single stacked in_proj weight (D, 3*e*D).

    Column layout (d-major inside each section, matching the kernel slices):
      [0 : e*D)        e copies of the silu-input weight       (inp broadcast over d)
      [e*D : 2*e*D)    output-gate weight, column j <- (j//e)*e + d   (head gather)
      [2*e*D : 3*e*D)  forget-gate weight, gathered the same way
    Duplicating columns is bit-identical to gathering after the activation.
    """
    W_in, b_in = raw["W_in"], raw["b_in"]
    Wi, bi = W_in[:D].T, b_in[:D]
    Wog, bog = W_in[D:2 * D].T, b_in[D:2 * D]
    Wfg, bfg = W_in[2 * D:].T, b_in[2 * D:]

    j = jnp.arange(D)
    cols, bias = [], []
    for _ in range(e):                       # silu input, replicated per d
        cols.append(Wi)
        bias.append(bi)
    for d in range(e):                       # output gate, head-gathered
        idx = (j // e) * e + d
        cols.append(Wog[:, idx])
        bias.append(bog[idx])
    for d in range(e):                       # forget gate, head-gathered
        idx = (j // e) * e + d
        cols.append(Wfg[:, idx])
        bias.append(bfg[idx])

    w_stack = jnp.concatenate(cols, axis=1)                  # (D, 3*e*D)
    b_stack = jnp.concatenate(bias, axis=0).reshape(1, 3 * e * D)

    return dict(
        expand_ratio=e,
        w_stack=w_stack, b_stack=b_stack,
        gamma=raw["gamma"].reshape(1, D), beta=raw["beta"].reshape(1, D),
        wout=raw["W_out"].T, bout=raw["b_out"].reshape(1, D),
    )


# ------------------------ pure-JAX reference ------------------------------- #

def ref_compute(x_seq, raw, e):
    N, M, D = x_seq.shape
    feat = jnp.einsum("nmd,kd->nmk", x_seq, raw["W_in"],
                      precision="highest") + raw["b_in"]
    inp, og, fg = jnp.split(feat, 3, axis=-1)
    inp = inp * jax.nn.sigmoid(inp)
    og = jax.nn.sigmoid(og)
    lam = jax.nn.sigmoid(fg)                                         # lower_bound = 0
    h = D // e
    inp_r = inp.reshape(N, M, h, e)
    og_r = og.reshape(N, M, h, e)
    lam_r = lam.reshape(N, M, h, e)
    u = (1.0 - lam_r)[..., :, None] * inp_r[..., None, :]            # (N,M,h,d,e)
    lam_f = jnp.broadcast_to(lam_r[..., None], u.shape)
    u = u.reshape(N, M, h * e * e)
    lam_f = lam_f.reshape(N, M, h * e * e)

    def step(carry, xs):
        u_t, l_t = xs
        s = l_t * carry + u_t
        return s, s

    init = jnp.zeros((M, h * e * e), jnp.float32)
    _, s_f = jax.lax.scan(step, init, (u, lam_f))
    _, s_r = jax.lax.scan(step, init, (u[::-1], lam_f[::-1]))
    s = (s_f + s_r[::-1]).reshape(N, M, h, e, e)
    y = jnp.einsum("nmhde,nmhd->nmhe", s, og_r).reshape(N, M, D)
    mu = y.mean(-1, keepdims=True)
    var = ((y - mu) ** 2).mean(-1, keepdims=True)
    yn = (y - mu) / jnp.sqrt(var + 1e-5) * raw["gamma"] + raw["beta"]
    return jnp.einsum("nmd,kd->nmk", yn, raw["W_out"],
                      precision="highest") + raw["b_out"]


def ref_forward(x, raw, e):
    H, W, B, D = x.shape
    y1 = ref_compute(x.reshape(H, W * B, D), raw, e)
    y1 = y1.reshape(H, W, B, D).transpose(1, 0, 2, 3).reshape(W, H * B, D)
    y2 = ref_compute(y1, raw, e)
    return y2.reshape(W, H, B, D).transpose(1, 0, 2, 3)


# --------------------------------- main ------------------------------------ #

if __name__ == "__main__":
    H, W, B, D, e = 8, 8, 2, 32, 2
    key = jax.random.PRNGKey(0)
    kx, kparam = jax.random.split(key)
    x = jax.random.normal(kx, (H, W, B, D), jnp.float32)

    raw = init_raw_params(kparam, D)
    kp = make_kernel_params(raw, D, e)

    out = jax.block_until_ready(hgru2_2d_forward(x, kp))
    ref = jax.block_until_ready(ref_forward(x, raw, e))

    assert out.shape == (H, W, B, D), out.shape
    max_err = float(jnp.max(jnp.abs(out - ref)))
    assert max_err < 2e-2, f"max abs err too large: {max_err}"
    print("KERNEL_OK")
</pallas_src>

<mosaic_0001>
module attributes {stable_mosaic.version = 11 : i64} {
  func.func @hgru_pass_kernel(%arg0: i32, %arg1: memref<8x16x32xf32, #tpu.memory_space<vmem>>, %arg2: memref<32x192xf32, #tpu.memory_space<vmem>>, %arg3: memref<1x192xf32, #tpu.memory_space<vmem>>, %arg4: memref<1x32xf32, #tpu.memory_space<vmem>>, %arg5: memref<1x32xf32, #tpu.memory_space<vmem>>, %arg6: memref<32x32xf32, #tpu.memory_space<vmem>>, %arg7: memref<1x32xf32, #tpu.memory_space<vmem>>, %arg8: memref<8x16x32xf32, #tpu.memory_space<vmem>>, %arg9: memref<8x16x64xf32, #tpu.memory_space<vmem>>, %arg10: memref<8x16x64xf32, #tpu.memory_space<vmem>>, %arg11: memref<8x16x64xf32, #tpu.memory_space<vmem>>, %arg12: memref<8x16x64xf32, #tpu.memory_space<vmem>>, %arg13: memref<8x16x32xf32, #tpu.memory_space<vmem>>, %arg14: memref<16x64xf32, #tpu.memory_space<vmem>>) attributes {dimension_semantics = [#tpu.dimension_semantics<parallel>], iteration_bounds = array<i64: 1>, scalar_prefetch = 0 : i64, scratch_operands = 6 : i64, tpu.core_type = #tpu.core_type<tc>, window_params = [{transform_indices = @transform_0, window_bounds = array<i64: 8, 16, 32>}, {pipeline_mode = #tpu.pipeline_mode<synchronous>, transform_indices = @transform_1, window_bounds = array<i64: 32, 192>}, {pipeline_mode = #tpu.pipeline_mode<synchronous>, transform_indices = @transform_2, window_bounds = array<i64: 1, 192>}, {pipeline_mode = #tpu.pipeline_mode<synchronous>, transform_indices = @transform_3, window_bounds = array<i64: 1, 32>}, {pipeline_mode = #tpu.pipeline_mode<synchronous>, transform_indices = @transform_4, window_bounds = array<i64: 1, 32>}, {pipeline_mode = #tpu.pipeline_mode<synchronous>, transform_indices = @transform_5, window_bounds = array<i64: 32, 32>}, {pipeline_mode = #tpu.pipeline_mode<synchronous>, transform_indices = @transform_6, window_bounds = array<i64: 1, 32>}, {transform_indices = @transform_7, window_bounds = array<i64: 8, 16, 32>}]} {
    %c0 = arith.constant 0 : index
    %c0_0 = arith.constant 0 : index
    %c0_1 = arith.constant 0 : index
    %0 = vector.load %arg1[%c0, %c0_0, %c0_1] : memref<8x16x32xf32, #tpu.memory_space<vmem>>, vector<8x16x32xf32>
    %1 = vector.shape_cast %0 : vector<8x16x32xf32> to vector<128x32xf32>
    %c0_2 = arith.constant 0 : index
    %c0_3 = arith.constant 0 : index
    %2 = vector.load %arg2[%c0_2, %c0_3] : memref<32x192xf32, #tpu.memory_space<vmem>>, vector<32x192xf32>
    %cst = arith.constant dense<0.000000e+00> : vector<128x192xf32>
    %3 = tpu.matmul %1, %2, %cst {dimension_numbers = #tpu.dot_dimension_numbers<[1], [0], [0], [1], [0, 0, 1, 1], [], []>} : vector<128x32xf32>, vector<32x192xf32>, vector<128x192xf32> -> vector<128x192xf32>
    %c0_4 = arith.constant 0 : index
    %c0_5 = arith.constant 0 : index
    %4 = vector.load %arg3[%c0_4, %c0_5] : memref<1x192xf32, #tpu.memory_space<vmem>>, vector<1x192xf32>
    %5 = vector.broadcast %4 : vector<1x192xf32> to vector<128x192xf32>
    %6 = arith.addf %3, %5 : vector<128x192xf32>
    %7 = vector.extract_strided_slice %6 {offsets = [0, 0], sizes = [128, 64], strides = [1, 1]} : vector<128x192xf32> to vector<128x64xf32>
    %8 = arith.negf %7 : vector<128x64xf32>
    %9 = math.exp %8 : vector<128x64xf32>
    %cst_6 = arith.constant 1.000000e+00 : f32
    %10 = vector.broadcast %cst_6 : f32 to vector<128x64xf32>
    %11 = arith.addf %10, %9 : vector<128x64xf32>
    %12 = arith.divf %10, %11 : vector<128x64xf32>
    %13 = arith.mulf %7, %12 : vector<128x64xf32>
    %14 = vector.extract_strided_slice %6 {offsets = [0, 64], sizes = [128, 64], strides = [1, 1]} : vector<128x192xf32> to vector<128x64xf32>
    %15 = arith.negf %14 : vector<128x64xf32>
    %16 = math.exp %15 : vector<128x64xf32>
    %cst_7 = arith.constant 1.000000e+00 : f32
    %17 = vector.broadcast %cst_7 : f32 to vector<128x64xf32>
    %18 = arith.addf %17, %16 : vector<128x64xf32>
    %19 = arith.divf %17, %18 : vector<128x64xf32>
    %20 = vector.extract_strided_slice %6 {offsets = [0, 128], sizes = [128, 64], strides = [1, 1]} : vector<128x192xf32> to vector<128x64xf32>
    %21 = arith.negf %20 : vector<128x64xf32>
    %22 = math.exp %21 : vector<128x64xf32>
    %cst_8 = arith.constant 1.000000e+00 : f32
    %23 = vector.broadcast %cst_8 : f32 to vector<128x64xf32>
    %24 = arith.addf %23, %22 : vector<128x64xf32>
    %25 = arith.divf %23, %24 : vector<128x64xf32>
    %cst_9 = arith.constant 1.000000e+00 : f32
    %26 = vector.broadcast %cst_9 : f32 to vector<128x64xf32>
    %27 = arith.subf %26, %25 : vector<128x64xf32>
    %28 = arith.mulf %27, %13 : vector<128x64xf32>
    %29 = vector.shape_cast %28 : vector<128x64xf32> to vector<8x16x64xf32>
    %c0_10 = arith.constant 0 : index
    %c0_11 = arith.constant 0 : index
    %c0_12 = arith.constant 0 : index
    %30 = vector.load %arg9[%c0_10, %c0_11, %c0_12] : memref<8x16x64xf32, #tpu.memory_space<vmem>>, vector<8x16x64xf32>
    tpu.vector_store %arg9[%c0_10, %c0_11, %c0_12], %29 {strides = array<i32>} : memref<8x16x64xf32, #tpu.memory_space<vmem>>, vector<8x16x64xf32>,
    %31 = vector.shape_cast %25 : vector<128x64xf32> to vector<8x16x64xf32>
    %c0_13 = arith.constant 0 : index
    %c0_14 = arith.constant 0 : index
    %c0_15 = arith.constant 0 : index
    %32 = vector.load %arg10[%c0_13, %c0_14, %c0_15] : memref<8x16x64xf32, #tpu.memory_space<vmem>>, vector<8x16x64xf32>
    tpu.vector_store %arg10[%c0_13, %c0_14, %c0_15], %31 {strides = array<i32>} : memref<8x16x64xf32, #tpu.memory_space<vmem>>, vector<8x16x64xf32>,
    %33 = vector.shape_cast %19 : vector<128x64xf32> to vector<8x16x64xf32>
    %c0_16 = arith.constant 0 : index
    %c0_17 = arith.constant 0 : index
    %c0_18 = arith.constant 0 : index
    %34 = vector.load %arg11[%c0_16, %c0_17, %c0_18] : memref<8x16x64xf32, #tpu.memory_space<vmem>>, vector<8x16x64xf32>
    tpu.vector_store %arg11[%c0_16, %c0_17, %c0_18], %33 {strides = array<i32>} : memref<8x16x64xf32, #tpu.memory_space<vmem>>, vector<8x16x64xf32>,
    %cst_19 = arith.constant 0.000000e+00 : f32
    %35 = vector.broadcast %cst_19 : f32 to vector<16x64xf32>
    %c0_20 = arith.constant 0 : index
    %c0_21 = arith.constant 0 : index
    %36 = vector.load %arg14[%c0_20, %c0_21] : memref<16x64xf32, #tpu.memory_space<vmem>>, vector<16x64xf32>
    tpu.vector_store %arg14[%c0_20, %c0_21], %35 {strides = array<i32>} : memref<16x64xf32, #tpu.memory_space<vmem>>, vector<16x64xf32>,
    %c0_i32 = arith.constant 0 : i32
    %c7_i32 = arith.constant 7 : i32
    %37 = arith.subi %c7_i32, %c0_i32 : i32
    %38 = arith.index_cast %37 : i32 to index
    %c0_22 = arith.constant 0 : index
    %c0_23 = arith.constant 0 : index
    %39 = vector.load %arg10[%38, %c0_22, %c0_23] : memref<8x16x64xf32, #tpu.memory_space<vmem>>, vector<1x16x64xf32>
    %40 = vector.shape_cast %39 : vector<1x16x64xf32> to vector<16x64xf32>
    %c0_24 = arith.constant 0 : index
    %c0_25 = arith.constant 0 : index
    %41 = vector.load %arg14[%c0_24, %c0_25] : memref<16x64xf32, #tpu.memory_space<vmem>>, vector<16x64xf32>
    %42 = arith.mulf %40, %41 : vector<16x64xf32>
    %43 = arith.index_cast %37 : i32 to index
    %c0_26 = arith.constant 0 : index
    %c0_27 = arith.constant 0 : index
    %44 = vector.load %arg9[%43, %c0_26, %c0_27] : memref<8x16x64xf32, #tpu.memory_space<vmem>>, vector<1x16x64xf32>
    %45 = vector.shape_cast %44 : vector<1x16x64xf32> to vector<16x64xf32>
    %46 = arith.addf %42, %45 : vector<16x64xf32>
    %c0_28 = arith.constant 0 : index
    %c0_29 = arith.constant 0 : index
    %47 = vector.load %arg14[%c0_28, %c0_29] : memref<16x64xf32, #tpu.memory_space<vmem>>, vector<16x64xf32>
    tpu.vector_store %arg14[%c0_28, %c0_29], %46 {strides = array<i32>} : memref<16x64xf32, #tpu.memory_space<vmem>>, vector<16x64xf32>,
    %48 = arith.index_cast %37 : i32 to index
    %c0_30 = arith.constant 0 : index
    %c0_31 = arith.constant 0 : index
    %49 = vector.load %arg12[%48, %c0_30, %c0_31] : memref<8x16x64xf32, #tpu.memory_space<vmem>>, vector<1x16x64xf32>
    %50 = vector.shape_cast %49 : vector<1x16x64xf32> to vector<16x64xf32>
    %51 = vector.shape_cast %46 : vector<16x64xf32> to vector<1x16x64xf32>
    tpu.vector_store %arg12[%48, %c0_30, %c0_31], %51 {strides = array<i32>} : memref<8x16x64xf32, #tpu.memory_space<vmem>>, vector<1x16x64xf32>,
    %c1_i32 = arith.constant 1 : i32
    %c7_i32_32 = arith.constant 7 : i32
    %52 = arith.subi %c7_i32_32, %c1_i32 : i32
    %53 = arith.index_cast %52 : i32 to index
    %c0_33 = arith.constant 0 : index
    %c0_34 = arith.constant 0 : index
    %54 = vector.load %arg10[%53, %c0_33, %c0_34] : memref<8x16x64xf32, #tpu.memory_space<vmem>>, vector<1x16x64xf32>
    %55 = vector.shape_cast %54 : vector<1x16x64xf32> to vector<16x64xf32>
    %c0_35 = arith.constant 0 : index
    %c0_36 = arith.constant 0 : index
    %56 = vector.load %arg14[%c0_35, %c0_36] : memref<16x64xf32, #tpu.memory_space<vmem>>, vector<16x64xf32>
    %57 = arith.mulf %55, %56 : vector<16x64xf32>
    %58 = arith.index_cast %52 : i32 to index
    %c0_37 = arith.constant 0 : index
    %c0_38 = arith.constant 0 : index
    %59 = vector.load %arg9[%58, %c0_37, %c0_38] : memref<8x16x64xf32, #tpu.memory_space<vmem>>, vector<1x16x64xf32>
    %60 = vector.shape_cast %59 : vector<1x16x64xf32> to vector<16x64xf32>
    %61 = arith.addf %57, %60 : vector<16x64xf32>
    %c0_39 = arith.constant 0 : index
    %c0_40 = arith.constant 0 : index
    %62 = vector.load %arg14[%c0_39, %c0_40] : memref<16x64xf32, #tpu.memory_space<vmem>>, vector<16x64xf32>
    tpu.vector_store %arg14[%c0_39, %c0_40], %61 {strides = array<i32>} : memref<16x64xf32, #tpu.memory_space<vmem>>, vector<16x64xf32>,
    %63 = arith.index_cast %52 : i32 to index
    %c0_41 = arith.constant 0 : index
    %c0_42 = arith.constant 0 : index
    %64 = vector.load %arg12[%63, %c0_41, %c0_42] : memref<8x16x64xf32, #tpu.memory_space<vmem>>, vector<1x16x64xf32>
    %65 = vector.shape_cast %64 : vector<1x16x64xf32> to vector<16x64xf32>
    %66 = vector.shape_cast %61 : vector<16x64xf32> to vector<1x16x64xf32>
    tpu.vector_store %arg12[%63, %c0_41, %c0_42], %66 {strides = array<i32>} : memref<8x16x64xf32, #tpu.memory_space<vmem>>, vector<1x16x64xf32>,
    %c2_i32 = arith.constant 2 : i32
    %c7_i32_43 = arith.constant 7 : i32
    %67 = arith.subi %c7_i32_43, %c2_i32 : i32
    %68 = arith.index_cast %67 : i32 to index
    %c0_44 = arith.constant 0 : index
    %c0_45 = arith.constant 0 : index
    %69 = vector.load %arg10[%68, %c0_44, %c0_45] : memref<8x16x64xf32, #tpu.memory_space<vmem>>, vector<1x16x64xf32>
    %70 = vector.shape_cast %69 : vector<1x16x64xf32> to vector<16x64xf32>
    %c0_46 = arith.constant 0 : index
    %c0_47 = arith.constant 0 : index
    %71 = vector.load %arg14[%c0_46, %c0_47] : memref<16x64xf32, #tpu.memory_space<vmem>>, vector<16x64xf32>
    %72 = arith.mulf %70, %71 : vector<16x64xf32>
    %73 = arith.index_cast %67 : i32 to index
    %c0_48 = arith.constant 0 : index
    %c0_49 = arith.constant 0 : index
    %74 = vector.load %arg9[%73, %c0_48, %c0_49] : memref<8x16x64xf32, #tpu.memory_space<vmem>>, vector<1x16x64xf32>
    %75 = vector.shape_cast %74 : vector<1x16x64xf32> to vector<16x64xf32>
    %76 = arith.addf %72, %75 : vector<16x64xf32>
    %c0_50 = arith.constant 0 : index
    %c0_51 = arith.constant 0 : index
    %77 = vector.load %arg14[%c0_50, %c0_51] : memref<16x64xf32, #tpu.memory_space<vmem>>, vector<16x64xf32>
    tpu.vector_store %arg14[%c0_50, %c0_51], %76 {strides = array<i32>} : memref<16x64xf32, #tpu.memory_space<vmem>>, vector<16x64xf32>,
    %78 = arith.index_cast %67 : i32 to index
    %c0_52 = arith.constant 0 : index
    %c0_53 = arith.constant 0 : index
    %79 = vector.load %arg12[%78, %c0_52, %c0_53] : memref<8x16x64xf32, #tpu.memory_space<vmem>>, vector<1x16x64xf32>
    %80 = vector.shape_cast %79 : vector<1x16x64xf32> to vector<16x64xf32>
    %81 = vector.shape_cast %76 : vector<16x64xf32> to vector<1x16x64xf32>
    tpu.vector_store %arg12[%78, %c0_52, %c0_53], %81 {strides = array<i32>} : memref<8x16x64xf32, #tpu.memory_space<vmem>>, vector<1x16x64xf32>,
    %c3_i32 = arith.constant 3 : i32
    %c7_i32_54 = arith.constant 7 : i32
    %82 = arith.subi %c7_i32_54, %c3_i32 : i32
    %83 = arith.index_cast %82 : i32 to index
    %c0_55 = arith.constant 0 : index
    %c0_56 = arith.constant 0 : index
    %84 = vector.load %arg10[%83, %c0_55, %c0_56] : memref<8x16x64xf32, #tpu.memory_space<vmem>>, vector<1x16x64xf32>
    %85 = vector.shape_cast %84 : vector<1x16x64xf32> to vector<16x64xf32>
    %c0_57 = arith.constant 0 : index
    %c0_58 = arith.constant 0 : index
    %86 = vector.load %arg14[%c0_57, %c0_58] : memref<16x64xf32, #tpu.memory_space<vmem>>, vector<16x64xf32>
    %87 = arith.mulf %85, %86 : vector<16x64xf32>
    %88 = arith.index_cast %82 : i32 to index
    %c0_59 = arith.constant 0 : index
    %c0_60 = arith.constant 0 : index
    %89 = vector.load %arg9[%88, %c0_59, %c0_60] : memref<8x16x64xf32, #tpu.memory_space<vmem>>, vector<1x16x64xf32>
    %90 = vector.shape_cast %89 : vector<1x16x64xf32> to vector<16x64xf32>
    %91 = arith.addf %87, %90 : vector<16x64xf32>
    %c0_61 = arith.constant 0 : index
    %c0_62 = arith.constant 0 : index
    %92 = vector.load %arg14[%c0_61, %c0_62] : memref<16x64xf32, #tpu.memory_space<vmem>>, vector<16x64xf32>
    tpu.vector_store %arg14[%c0_61, %c0_62], %91 {strides = array<i32>} : memref<16x64xf32, #tpu.memory_space<vmem>>, vector<16x64xf32>,
    %93 = arith.index_cast %82 : i32 to index
    %c0_63 = arith.constant 0 : index
    %c0_64 = arith.constant 0 : index
    %94 = vector.load %arg12[%93, %c0_63, %c0_64] : memref<8x16x64xf32, #tpu.memory_space<vmem>>, vector<1x16x64xf32>
    %95 = vector.shape_cast %94 : vector<1x16x64xf32> to vector<16x64xf32>
    %96 = vector.shape_cast %91 : vector<16x64xf32> to vector<1x16x64xf32>
    tpu.vector_store %arg12[%93, %c0_63, %c0_64], %96 {strides = array<i32>} : memref<8x16x64xf32, #tpu.memory_space<vmem>>, vector<1x16x64xf32>,
    %c4_i32 = arith.constant 4 : i32
    %c7_i32_65 = arith.constant 7 : i32
    %97 = arith.subi %c7_i32_65, %c4_i32 : i32
    %98 = arith.index_cast %97 : i32 to index
    %c0_66 = arith.constant 0 : index
    %c0_67 = arith.constant 0 : index
    %99 = vector.load %arg10[%98, %c0_66, %c0_67] : memref<8x16x64xf32, #tpu.memory_space<vmem>>, vector<1x16x64xf32>
    %100 = vector.shape_cast %99 : vector<1x16x64xf32> to vector<16x64xf32>
    %c0_68 = arith.constant 0 : index
    %c0_69 = arith.constant 0 : index
    %101 = vector.load %arg14[%c0_68, %c0_69] : memref<16x64xf32, #tpu.memory_space<vmem>>, vector<16x64xf32>
    %102 = arith.mulf %100, %101 : vector<16x64xf32>
    %103 = arith.index_cast %97 : i32 to index
    %c0_70 = arith.constant 0 : index
    %c0_71 = arith.constant 0 : index
    %104 = vector.load %arg9[%103, %c0_70, %c0_71] : memref<8x16x64xf32, #tpu.memory_space<vmem>>, vector<1x16x64xf32>
    %105 = vector.shape_cast %104 : vector<1x16x64xf32> to vector<16x64xf32>
    %106 = arith.addf %102, %105 : vector<16x64xf32>
    %c0_72 = arith.constant 0 : index
    %c0_73 = arith.constant 0 : index
    %107 = vector.load %arg14[%c0_72, %c0_73] : memref<16x64xf32, #tpu.memory_space<vmem>>, vector<16x64xf32>
    tpu.vector_store %arg14[%c0_72, %c0_73], %106 {strides = array<i32>} : memref<16x64xf32, #tpu.memory_space<vmem>>, vector<16x64xf32>,
    %108 = arith.index_cast %97 : i32 to index
    %c0_74 = arith.constant 0 : index
    %c0_75 = arith.constant 0 : index
    %109 = vector.load %arg12[%108, %c0_74, %c0_75] : memref<8x16x64xf32, #tpu.memory_space<vmem>>, vector<1x16x64xf32>
    %110 = vector.shape_cast %109 : vector<1x16x64xf32> to vector<16x64xf32>
    %111 = vector.shape_cast %106 : vector<16x64xf32> to vector<1x16x64xf32>
    tpu.vector_store %arg12[%108, %c0_74, %c0_75], %111 {strides = array<i32>} : memref<8x16x64xf32, #tpu.memory_space<vmem>>, vector<1x16x64xf32>,
    %c5_i32 = arith.constant 5 : i32
    %c7_i32_76 = arith.constant 7 : i32
    %112 = arith.subi %c7_i32_76, %c5_i32 : i32
    %113 = arith.index_cast %112 : i32 to index
    %c0_77 = arith.constant 0 : index
    %c0_78 = arith.constant 0 : index
    %114 = vector.load %arg10[%113, %c0_77, %c0_78] : memref<8x16x64xf32, #tpu.memory_space<vmem>>, vector<1x16x64xf32>
    %115 = vector.shape_cast %114 : vector<1x16x64xf32> to vector<16x64xf32>
    %c0_79 = arith.constant 0 : index
    %c0_80 = arith.constant 0 : index
    %116 = vector.load %arg14[%c0_79, %c0_80] : memref<16x64xf32, #tpu.memory_space<vmem>>, vector<16x64xf32>
    %117 = arith.mulf %115, %116 : vector<16x64xf32>
    %118 = arith.index_cast %112 : i32 to index
    %c0_81 = arith.constant 0 : index
    %c0_82 = arith.constant 0 : index
    %119 = vector.load %arg9[%118, %c0_81, %c0_82] : memref<8x16x64xf32, #tpu.memory_space<vmem>>, vector<1x16x64xf32>
    %120 = vector.shape_cast %119 : vector<1x16x64xf32> to vector<16x64xf32>
    %121 = arith.addf %117, %120 : vector<16x64xf32>
    %c0_83 = arith.constant 0 : index
    %c0_84 = arith.constant 0 : index
    %122 = vector.load %arg14[%c0_83, %c0_84] : memref<16x64xf32, #tpu.memory_space<vmem>>, vector<16x64xf32>
    tpu.vector_store %arg14[%c0_83, %c0_84], %121 {strides = array<i32>} : memref<16x64xf32, #tpu.memory_space<vmem>>, vector<16x64xf32>,
    %123 = arith.index_cast %112 : i32 to index
    %c0_85 = arith.constant 0 : index
    %c0_86 = arith.constant 0 : index
    %124 = vector.load %arg12[%123, %c0_85, %c0_86] : memref<8x16x64xf32, #tpu.memory_space<vmem>>, vector<1x16x64xf32>
    %125 = vector.shape_cast %124 : vector<1x16x64xf32> to vector<16x64xf32>
    %126 = vector.shape_cast %121 : vector<16x64xf32> to vector<1x16x64xf32>
    tpu.vector_store %arg12[%123, %c0_85, %c0_86], %126 {strides = array<i32>} : memref<8x16x64xf32, #tpu.memory_space<vmem>>, vector<1x16x64xf32>,
    %c6_i32 = arith.constant 6 : i32
    %c7_i32_87 = arith.constant 7 : i32
    %127 = arith.subi %c7_i32_87, %c6_i32 : i32
    %128 = arith.index_cast %127 : i32 to index
    %c0_88 = arith.constant 0 : index
    %c0_89 = arith.constant 0 : index
    %129 = vector.load %arg10[%128, %c0_88, %c0_89] : memref<8x16x64xf32, #tpu.memory_space<vmem>>, vector<1x16x64xf32>
    %130 = vector.shape_cast %129 : vector<1x16x64xf32> to vector<16x64xf32>
    %c0_90 = arith.constant 0 : index
    %c0_91 = arith.constant 0 : index
    %131 = vector.load %arg14[%c0_90, %c0_91] : memref<16x64xf32, #tpu.memory_space<vmem>>, vector<16x64xf32>
    %132 = arith.mulf %130, %131 : vector<16x64xf32>
    %133 = arith.index_cast %127 : i32 to index
    %c0_92 = arith.constant 0 : index
    %c0_93 = arith.constant 0 : index
    %134 = vector.load %arg9[%133, %c0_92, %c0_93] : memref<8x16x64xf32, #tpu.memory_space<vmem>>, vector<1x16x64xf32>
    %135 = vector.shape_cast %134 : vector<1x16x64xf32> to vector<16x64xf32>
    %136 = arith.addf %132, %135 : vector<16x64xf32>
    %c0_94 = arith.constant 0 : index
    %c0_95 = arith.constant 0 : index
    %137 = vector.load %arg14[%c0_94, %c0_95] : memref<16x64xf32, #tpu.memory_space<vmem>>, vector<16x64xf32>
    tpu.vector_store %arg14[%c0_94, %c0_95], %136 {strides = array<i32>} : memref<16x64xf32, #tpu.memory_space<vmem>>, vector<16x64xf32>,
    %138 = arith.index_cast %127 : i32 to index
    %c0_96 = arith.constant 0 : index
    %c0_97 = arith.constant 0 : index
    %139 = vector.load %arg12[%138, %c0_96, %c0_97] : memref<8x16x64xf32, #tpu.memory_space<vmem>>, vector<1x16x64xf32>
    %140 = vector.shape_cast %139 : vector<1x16x64xf32> to vector<16x64xf32>
    %141 = vector.shape_cast %136 : vector<16x64xf32> to vector<1x16x64xf32>
    tpu.vector_store %arg12[%138, %c0_96, %c0_97], %141 {strides = array<i32>} : memref<8x16x64xf32, #tpu.memory_space<vmem>>, vector<1x16x64xf32>,
    %c7_i32_98 = arith.constant 7 : i32
    %c7_i32_99 = arith.constant 7 : i32
    %142 = arith.subi %c7_i32_99, %c7_i32_98 : i32
    %143 = arith.index_cast %142 : i32 to index
    %c0_100 = arith.constant 0 : index
    %c0_101 = arith.constant 0 : index
    %144 = vector.load %arg10[%143, %c0_100, %c0_101] : memref<8x16x64xf32, #tpu.memory_space<vmem>>, vector<1x16x64xf32>
    %145 = vector.shape_cast %144 : vector<1x16x64xf32> to vector<16x64xf32>
    %c0_102 = arith.constant 0 : index
    %c0_103 = arith.constant 0 : index
    %146 = vector.load %arg14[%c0_102, %c0_103] : memref<16x64xf32, #tpu.memory_space<vmem>>, vector<16x64xf32>
    %147 = arith.mulf %145, %146 : vector<16x64xf32>
    %148 = arith.index_cast %142 : i32 to index
    %c0_104 = arith.constant 0 : index
    %c0_105 = arith.constant 0 : index
    %149 = vector.load %arg9[%148, %c0_104, %c0_105] : memref<8x16x64xf32, #tpu.memory_space<vmem>>, vector<1x16x64xf32>
    %150 = vector.shape_cast %149 : vector<1x16x64xf32> to vector<16x64xf32>
    %151 = arith.addf %147, %150 : vector<16x64xf32>
    %c0_106 = arith.constant 0 : index
    %c0_107 = arith.constant 0 : index
    %152 = vector.load %arg14[%c0_106, %c0_107] : memref<16x64xf32, #tpu.memory_space<vmem>>, vector<16x64xf32>
    tpu.vector_store %arg14[%c0_106, %c0_107], %151 {strides = array<i32>} : memref<16x64xf32, #tpu.memory_space<vmem>>, vector<16x64xf32>,
    %153 = arith.index_cast %142 : i32 to index
    %c0_108 = arith.constant 0 : index
    %c0_109 = arith.constant 0 : index
    %154 = vector.load %arg12[%153, %c0_108, %c0_109] : memref<8x16x64xf32, #tpu.memory_space<vmem>>, vector<1x16x64xf32>
    %155 = vector.shape_cast %154 : vector<1x16x64xf32> to vector<16x64xf32>
    %156 = vector.shape_cast %151 : vector<16x64xf32> to vector<1x16x64xf32>
    tpu.vector_store %arg12[%153, %c0_108, %c0_109], %156 {strides = array<i32>} : memref<8x16x64xf32, #tpu.memory_space<vmem>>, vector<1x16x64xf32>,
    %c8_i32 = arith.constant 8 : i32
    %cst_110 = arith.constant 0.000000e+00 : f32
    %157 = vector.broadcast %cst_110 : f32 to vector<16x64xf32>
    %c0_111 = arith.constant 0 : index
    %c0_112 = arith.constant 0 : index
    %158 = vector.load %arg14[%c0_111, %c0_112] : memref<16x64xf32, #tpu.memory_space<vmem>>, vector<16x64xf32>
    tpu.vector_store %arg14[%c0_111, %c0_112], %157 {strides = array<i32>} : memref<16x64xf32, #tpu.memory_space<vmem>>, vector<16x64xf32>,
    %c0_i32_113 = arith.constant 0 : i32
    %159 = arith.index_cast %c0_i32_113 : i32 to index
    %c0_114 = arith.constant 0 : index
    %c0_115 = arith.constant 0 : index
    %160 = vector.load %arg10[%159, %c0_114, %c0_115] : memref<8x16x64xf32, #tpu.memory_space<vmem>>, vector<1x16x64xf32>
    %161 = vector.shape_cast %160 : vector<1x16x64xf32> to vector<16x64xf32>
    %c0_116 = arith.constant 0 : index
    %c0_117 = arith.constant 0 : index
    %162 = vector.load %arg14[%c0_116, %c0_117] : memref<16x64xf32, #tpu.memory_space<vmem>>, vector<16x64xf32>
    %163 = arith.mulf %161, %162 : vector<16x64xf32>
    %164 = arith.index_cast %c0_i32_113 : i32 to index
    %c0_118 = arith.constant 0 : index
    %c0_119 = arith.constant 0 : index
    %165 = vector.load %arg9[%164, %c0_118, %c0_119] : memref<8x16x64xf32, #tpu.memory_space<vmem>>, vector<1x16x64xf32>
    %166 = vector.shape_cast %165 : vector<1x16x64xf32> to vector<16x64xf32>
    %167 = arith.addf %163, %166 : vector<16x64xf32>
    %c0_120 = arith.constant 0 : index
    %c0_121 = arith.constant 0 : index
    %168 = vector.load %arg14[%c0_120, %c0_121] : memref<16x64xf32, #tpu.memory_space<vmem>>, vector<16x64xf32>
    tpu.vector_store %arg14[%c0_120, %c0_121], %167 {strides = array<i32>} : memref<16x64xf32, #tpu.memory_space<vmem>>, vector<16x64xf32>,
    %169 = arith.index_cast %c0_i32_113 : i32 to index
    %c0_122 = arith.constant 0 : index
    %c0_123 = arith.constant 0 : index
    %170 = vector.load %arg12[%169, %c0_122, %c0_123] : memref<8x16x64xf32, #tpu.memory_space<vmem>>, vector<1x16x64xf32>
    %171 = vector.shape_cast %170 : vector<1x16x64xf32> to vector<16x64xf32>
    %172 = arith.addf %167, %171 : vector<16x64xf32>
    %173 = arith.index_cast %c0_i32_113 : i32 to index
    %c0_124 = arith.constant 0 : index
    %c0_125 = arith.constant 0 : index
    %174 = vector.load %arg11[%173, %c0_124, %c0_125] : memref<8x16x64xf32, #tpu.memory_space<vmem>>, vector<1x16x64xf32>
    %175 = vector.shape_cast %174 : vector<1x16x64xf32> to vector<16x64xf32>
    %176 = arith.mulf %172, %175 : vector<16x64xf32>
    %177 = vector.extract_strided_slice %176 {offsets = [0, 0], sizes = [16, 32], strides = [1, 1]} : vector<16x64xf32> to vector<16x32xf32>
    %178 = vector.extract_strided_slice %176 {offsets = [0, 32], sizes = [16, 32], strides = [1, 1]} : vector<16x64xf32> to vector<16x32xf32>
    %179 = arith.addf %177, %178 : vector<16x32xf32>
    %180 = arith.index_cast %c0_i32_113 : i32 to index
    %c0_126 = arith.constant 0 : index
    %c0_127 = arith.constant 0 : index
    %181 = vector.load %arg13[%180, %c0_126, %c0_127] : memref<8x16x32xf32, #tpu.memory_space<vmem>>, vector<1x16x32xf32>
    %182 = vector.shape_cast %181 : vector<1x16x32xf32> to vector<16x32xf32>
    %183 = vector.shape_cast %179 : vector<16x32xf32> to vector<1x16x32xf32>
    tpu.vector_store %arg13[%180, %c0_126, %c0_127], %183 {strides = array<i32>} : memref<8x16x32xf32, #tpu.memory_space<vmem>>, vector<1x16x32xf32>,
    %c1_i32_128 = arith.constant 1 : i32
    %184 = arith.index_cast %c1_i32_128 : i32 to index
    %c0_129 = arith.constant 0 : index
    %c0_130 = arith.constant 0 : index
    %185 = vector.load %arg10[%184, %c0_129, %c0_130] : memref<8x16x64xf32, #tpu.memory_space<vmem>>, vector<1x16x64xf32>
    %186 = vector.shape_cast %185 : vector<1x16x64xf32> to vector<16x64xf32>
    %c0_131 = arith.constant 0 : index
    %c0_132 = arith.constant 0 : index
    %187 = vector.load %arg14[%c0_131, %c0_132] : memref<16x64xf32, #tpu.memory_space<vmem>>, vector<16x64xf32>
    %188 = arith.mulf %186, %187 : vector<16x64xf32>
    %189 = arith.index_cast %c1_i32_128 : i32 to index
    %c0_133 = arith.constant 0 : index
    %c0_134 = arith.constant 0 : index
    %190 = vector.load %arg9[%189, %c0_133, %c0_134] : memref<8x16x64xf32, #tpu.memory_space<vmem>>, vector<1x16x64xf32>
    %191 = vector.shape_cast %190 : vector<1x16x64xf32> to vector<16x64xf32>
    %192 = arith.addf %188, %191 : vector<16x64xf32>
    %c0_135 = arith.constant 0 : index
    %c0_136 = arith.constant 0 : index
    %193 = vector.load %arg14[%c0_135, %c0_136] : memref<16x64xf32, #tpu.memory_space<vmem>>, vector<16x64xf32>
    tpu.vector_store %arg14[%c0_135, %c0_136], %192 {strides = array<i32>} : memref<16x64xf32, #tpu.memory_space<vmem>>, vector<16x64xf32>,
    %194 = arith.index_cast %c1_i32_128 : i32 to index
    %c0_137 = arith.constant 0 : index
    %c0_138 = arith.constant 0 : index
    %195 = vector.load %arg12[%194, %c0_137, %c0_138] : memref<8x16x64xf32, #tpu.memory_space<vmem>>, vector<1x16x64xf32>
    %196 = vector.shape_cast %195 : vector<1x16x64xf32> to vector<16x64xf32>
    %197 = arith.addf %192, %196 : vector<16x64xf32>
    %198 = arith.index_cast %c1_i32_128 : i32 to index
    %c0_139 = arith.constant 0 : index
    %c0_140 = arith.constant 0 : index
    %199 = vector.load %arg11[%198, %c0_139, %c0_140] : memref<8x16x64xf32, #tpu.memory_space<vmem>>, vector<1x16x64xf32>
    %200 = vector.shape_cast %199 : vector<1x16x64xf32> to vector<16x64xf32>
    %201 = arith.mulf %197, %200 : vector<16x64xf32>
    %202 = vector.extract_strided_slice %201 {offsets = [0, 0], sizes = [16, 32], strides = [1, 1]} : vector<16x64xf32> to vector<16x32xf32>
    %203 = vector.extract_strided_slice %201 {offsets = [0, 32], sizes = [16, 32], strides = [1, 1]} : vector<16x64xf32> to vector<16x32xf32>
    %204 = arith.addf %202, %203 : vector<16x32xf32>
    %205 = arith.index_cast %c1_i32_128 : i32 to index
    %c0_141 = arith.constant 0 : index
    %c0_142 = arith.constant 0 : index
    %206 = vector.load %arg13[%205, %c0_141, %c0_142] : memref<8x16x32xf32, #tpu.memory_space<vmem>>, vector<1x16x32xf32>
    %207 = vector.shape_cast %206 : vector<1x16x32xf32> to vector<16x32xf32>
    %208 = vector.shape_cast %204 : vector<16x32xf32> to vector<1x16x32xf32>
    tpu.vector_store %arg13[%205, %c0_141, %c0_142], %208 {strides = array<i32>} : memref<8x16x32xf32, #tpu.memory_space<vmem>>, vector<1x16x32xf32>,
    %c2_i32_143 = arith.constant 2 : i32
    %209 = arith.index_cast %c2_i32_143 : i32 to index
    %c0_144 = arith.constant 0 : index
    %c0_145 = arith.constant 0 : index
    %210 = vector.load %arg10[%209, %c0_144, %c0_145] : memref<8x16x64xf32, #tpu.memory_space<vmem>>, vector<1x16x64xf32>
    %211 = vector.shape_cast %210 : vector<1x16x64xf32> to vector<16x64xf32>
    %c0_146 = arith.constant 0 : index
    %c0_147 = arith.constant 0 : index
    %212 = vector.load %arg14[%c0_146, %c0_147] : memref<16x64xf32, #tpu.memory_space<vmem>>, vector<16x64xf32>
    %213 = arith.mulf %211, %212 : vector<16x64xf32>
    %214 = arith.index_cast %c2_i32_143 : i32 to index
    %c0_148 = arith.constant 0 : index
    %c0_149 = arith.constant 0 : index
    %215 = vector.load %arg9[%214, %c0_148, %c0_149] : memref<8x16x64xf32, #tpu.memory_space<vmem>>, vector<1x16x64xf32>
    %216 = vector.shape_cast %215 : vector<1x16x64xf32> to vector<16x64xf32>
    %217 = arith.addf %213, %216 : vector<16x64xf32>
    %c0_150 = arith.constant 0 : index
    %c0_151 = arith.constant 0 : index
    %218 = vector.load %arg14[%c0_150, %c0_151] : memref<16x64xf32, #tpu.memory_space<vmem>>, vector<16x64xf32>
    tpu.vector_store %arg14[%c0_150, %c0_151], %217 {strides = array<i32>} : memref<16x64xf32, #tpu.memory_space<vmem>>, vector<16x64xf32>,
    %219 = arith.index_cast %c2_i32_143 : i32 to index
    %c0_152 = arith.constant 0 : index
    %c0_153 = arith.constant 0 : index
    %220 = vector.load %arg12[%219, %c0_152, %c0_153] : memref<8x16x64xf32, #tpu.memory_space<vmem>>, vector<1x16x64xf32>
    %221 = vector.shape_cast %220 : vector<1x16x64xf32> to vector<16x64xf32>
    %222 = arith.addf %217, %221 : vector<16x64xf32>
    %223 = arith.index_cast %c2_i32_143 : i32 to index
    %c0_154 = arith.constant 0 : index
    %c0_155 = arith.constant 0 : index
    %224 = vector.load %arg11[%223, %c0_154, %c0_155] : memref<8x16x64xf32, #tpu.memory_space<vmem>>, vector<1x16x64xf32>
    %225 = vector.shape_cast %224 : vector<1x16x64xf32> to vector<16x64xf32>
    %226 = arith.mulf %222, %225 : vector<16x64xf32>
    %227 = vector.extract_strided_slice %226 {offsets = [0, 0], sizes = [16, 32], strides = [1, 1]} : vector<16x64xf32> to vector<16x32xf32>
    %228 = vector.extract_strided_slice %226 {offsets = [0, 32], sizes = [16, 32], strides = [1, 1]} : vector<16x64xf32> to vector<16x32xf32>
    %229 = arith.addf %227, %228 : vector<16x32xf32>
    %230 = arith.index_cast %c2_i32_143 : i32 to index
    %c0_156 = arith.constant 0 : index
    %c0_157 = arith.constant 0 : index
    %231 = vector.load %arg13[%230, %c0_156, %c0_157] : memref<8x16x32xf32, #tpu.memory_space<vmem>>, vector<1x16x32xf32>
    %232 = vector.shape_cast %231 : vector<1x16x32xf32> to vector<16x32xf32>
    %233 = vector.shape_cast %229 : vector<16x32xf32> to vector<1x16x32xf32>
    tpu.vector_store %arg13[%230, %c0_156, %c0_157], %233 {strides = array<i32>} : memref<8x16x32xf32, #tpu.memory_space<vmem>>, vector<1x16x32xf32>,
    %c3_i32_158 = arith.constant 3 : i32
    %234 = arith.index_cast %c3_i32_158 : i32 to index
    %c0_159 = arith.constant 0 : index
    %c0_160 = arith.constant 0 : index
    %235 = vector.load %arg10[%234, %c0_159, %c0_160] : memref<8x16x64xf32, #tpu.memory_space<vmem>>, vector<1x16x64xf32>
    %236 = vector.shape_cast %235 : vector<1x16x64xf32> to vector<16x64xf32>
    %c0_161 = arith.constant 0 : index
    %c0_162 = arith.constant 0 : index
    %237 = vector.load %arg14[%c0_161, %c0_162] : memref<16x64xf32, #tpu.memory_space<vmem>>, vector<16x64xf32>
    %238 = arith.mulf %236, %237 : vector<16x64xf32>
    %239 = arith.index_cast %c3_i32_158 : i32 to index
    %c0_163 = arith.constant 0 : index
    %c0_164 = arith.constant 0 : index
    %240 = vector.load %arg9[%239, %c0_163, %c0_164] : memref<8x16x64xf32, #tpu.memory_space<vmem>>, vector<1x16x64xf32>
    %241 = vector.shape_cast %240 : vector<1x16x64xf32> to vector<16x64xf32>
    %242 = arith.addf %238, %241 : vector<16x64xf32>
    %c0_165 = arith.constant 0 : index
    %c0_166 = arith.constant 0 : index
    %243 = vector.load %arg14[%c0_165, %c0_166] : memref<16x64xf32, #tpu.memory_space<vmem>>, vector<16x64xf32>
    tpu.vector_store %arg14[%c0_165, %c0_166], %242 {strides = array<i32>} : memref<16x64xf32, #tpu.memory_space<vmem>>, vector<16x64xf32>,
    %244 = arith.index_cast %c3_i32_158 : i32 to index
    %c0_167 = arith.constant 0 : index
    %c0_168 = arith.constant 0 : index
    %245 = vector.load %arg12[%244, %c0_167, %c0_168] : memref<8x16x64xf32, #tpu.memory_space<vmem>>, vector<1x16x64xf32>
    %246 = vector.shape_cast %245 : vector<1x16x64xf32> to vector<16x64xf32>
    %247 = arith.addf %242, %246 : vector<16x64xf32>
    %248 = arith.index_cast %c3_i32_158 : i32 to index
    %c0_169 = arith.constant 0 : index
    %c0_170 = arith.constant 0 : index
    %249 = vector.load %arg11[%248, %c0_169, %c0_170] : memref<8x16x64xf32, #tpu.memory_space<vmem>>, vector<1x16x64xf32>
    %250 = vector.shape_cast %249 : vector<1x16x64xf32> to vector<16x64xf32>
    %251 = arith.mulf %247, %250 : vector<16x64xf32>
    %252 = vector.extract_strided_slice %251 {offsets = [0, 0], sizes = [16, 32], strides = [1, 1]} : vector<16x64xf32> to vector<16x32xf32>
    %253 = vector.extract_strided_slice %251 {offsets = [0, 32], sizes = [16, 32], strides = [1, 1]} : vector<16x64xf32> to vector<16x32xf32>
    %254 = arith.addf %252, %253 : vector<16x32xf32>
    %255 = arith.index_cast %c3_i32_158 : i32 to index
    %c0_171 = arith.constant 0 : index
    %c0_172 = arith.constant 0 : index
    %256 = vector.load %arg13[%255, %c0_171, %c0_172] : memref<8x16x32xf32, #tpu.memory_space<vmem>>, vector<1x16x32xf32>
    %257 = vector.shape_cast %256 : vector<1x16x32xf32> to vector<16x32xf32>
    %258 = vector.shape_cast %254 : vector<16x32xf32> to vector<1x16x32xf32>
    tpu.vector_store %arg13[%255, %c0_171, %c0_172], %258 {strides = array<i32>} : memref<8x16x32xf32, #tpu.memory_space<vmem>>, vector<1x16x32xf32>,
    %c4_i32_173 = arith.constant 4 : i32
    %259 = arith.index_cast %c4_i32_173 : i32 to index
    %c0_174 = arith.constant 0 : index
    %c0_175 = arith.constant 0 : index
    %260 = vector.load %arg10[%259, %c0_174, %c0_175] : memref<8x16x64xf32, #tpu.memory_space<vmem>>, vector<1x16x64xf32>
    %261 = vector.shape_cast %260 : vector<1x16x64xf32> to vector<16x64xf32>
    %c0_176 = arith.constant 0 : index
    %c0_177 = arith.constant 0 : index
    %262 = vector.load %arg14[%c0_176, %c0_177] : memref<16x64xf32, #tpu.memory_space<vmem>>, vector<16x64xf32>
    %263 = arith.mulf %261, %262 : vector<16x64xf32>
    %264 = arith.index_cast %c4_i32_173 : i32 to index
    %c0_178 = arith.constant 0 : index
    %c0_179 = arith.constant 0 : index
    %265 = vector.load %arg9[%264, %c0_178, %c0_179] : memref<8x16x64xf32, #tpu.memory_space<vmem>>, vector<1x16x64xf32>
    %266 = vector.shape_cast %265 : vector<1x16x64xf32> to vector<16x64xf32>
    %267 = arith.addf %263, %266 : vector<16x64xf32>
    %c0_180 = arith.constant 0 : index
    %c0_181 = arith.constant 0 : index
    %268 = vector.load %arg14[%c0_180, %c0_181] : memref<16x64xf32, #tpu.memory_space<vmem>>, vector<16x64xf32>
    tpu.vector_store %arg14[%c0_180, %c0_181], %267 {strides = array<i32>} : memref<16x64xf32, #tpu.memory_space<vmem>>, vector<16x64xf32>,
    %269 = arith.index_cast %c4_i32_173 : i32 to index
    %c0_182 = arith.constant 0 : index
    %c0_183 = arith.constant 0 : index
    %270 = vector.load %arg12[%269, %c0_182, %c0_183] : memref<8x16x64xf32, #tpu.memory_space<vmem>>, vector<1x16x64xf32>
    %271 = vector.shape_cast %270 : vector<1x16x64xf32> to vector<16x64xf32>
    %272 = arith.addf %267, %271 : vector<16x64xf32>
    %273 = arith.index_cast %c4_i32_173 : i32 to index
    %c0_184 = arith.constant 0 : index
    %c0_185 = arith.constant 0 : index
    %274 = vector.load %arg11[%273, %c0_184, %c0_185] : memref<8x16x64xf32, #tpu.memory_space<vmem>>, vector<1x16x64xf32>
    %275 = vector.shape_cast %274 : vector<1x16x64xf32> to vector<16x64xf32>
    %276 = arith.mulf %272, %275 : vector<16x64xf32>
    %277 = vector.extract_strided_slice %276 {offsets = [0, 0], sizes = [16, 32], strides = [1, 1]} : vector<16x64xf32> to vector<16x32xf32>
    %278 = vector.extract_strided_slice %276 {offsets = [0, 32], sizes = [16, 32], strides = [1, 1]} : vector<16x64xf32> to vector<16x32xf32>
    %279 = arith.addf %277, %278 : vector<16x32xf32>
    %280 = arith.index_cast %c4_i32_173 : i32 to index
    %c0_186 = arith.constant 0 : index
    %c0_187 = arith.constant 0 : index
    %281 = vector.load %arg13[%280, %c0_186, %c0_187] : memref<8x16x32xf32, #tpu.memory_space<vmem>>, vector<1x16x32xf32>
    %282 = vector.shape_cast %281 : vector<1x16x32xf32> to vector<16x32xf32>
    %283 = vector.shape_cast %279 : vector<16x32xf32> to vector<1x16x32xf32>
    tpu.vector_store %arg13[%280, %c0_186, %c0_187], %283 {strides = array<i32>} : memref<8x16x32xf32, #tpu.memory_space<vmem>>, vector<1x16x32xf32>,
    %c5_i32_188 = arith.constant 5 : i32
    %284 = arith.index_cast %c5_i32_188 : i32 to index
    %c0_189 = arith.constant 0 : index
    %c0_190 = arith.constant 0 : index
    %285 = vector.load %arg10[%284, %c0_189, %c0_190] : memref<8x16x64xf32, #tpu.memory_space<vmem>>, vector<1x16x64xf32>
    %286 = vector.shape_cast %285 : vector<1x16x64xf32> to vector<16x64xf32>
    %c0_191 = arith.constant 0 : index
    %c0_192 = arith.constant 0 : index
    %287 = vector.load %arg14[%c0_191, %c0_192] : memref<16x64xf32, #tpu.memory_space<vmem>>, vector<16x64xf32>
    %288 = arith.mulf %286, %287 : vector<16x64xf32>
    %289 = arith.index_cast %c5_i32_188 : i32 to index
    %c0_193 = arith.constant 0 : index
    %c0_194 = arith.constant 0 : index
    %290 = vector.load %arg9[%289, %c0_193, %c0_194] : memref<8x16x64xf32, #tpu.memory_space<vmem>>, vector<1x16x64xf32>
    %291 = vector.shape_cast %290 : vector<1x16x64xf32> to vector<16x64xf32>
    %292 = arith.addf %288, %291 : vector<16x64xf32>
    %c0_195 = arith.constant 0 : index
    %c0_196 = arith.constant 0 : index
    %293 = vector.load %arg14[%c0_195, %c0_196] : memref<16x64xf32, #tpu.memory_space<vmem>>, vector<16x64xf32>
    tpu.vector_store %arg14[%c0_195, %c0_196], %292 {strides = array<i32>} : memref<16x64xf32, #tpu.memory_space<vmem>>, vector<16x64xf32>,
    %294 = arith.index_cast %c5_i32_188 : i32 to index
    %c0_197 = arith.constant 0 : index
    %c0_198 = arith.constant 0 : index
    %295 = vector.load %arg12[%294, %c0_197, %c0_198] : memref<8x16x64xf32, #tpu.memory_space<vmem>>, vector<1x16x64xf32>
    %296 = vector.shape_cast %295 : vector<1x16x64xf32> to vector<16x64xf32>
    %297 = arith.addf %292, %296 : vector<16x64xf32>
    %298 = arith.index_cast %c5_i32_188 : i32 to index
    %c0_199 = arith.constant 0 : index
    %c0_200 = arith.constant 0 : index
    %299 = vector.load %arg11[%298, %c0_199, %c0_200] : memref<8x16x64xf32, #tpu.memory_space<vmem>>, vector<1x16x64xf32>
    %300 = vector.shape_cast %299 : vector<1x16x64xf32> to vector<16x64xf32>
    %301 = arith.mulf %297, %300 : vector<16x64xf32>
    %302 = vector.extract_strided_slice %301 {offsets = [0, 0], sizes = [16, 32], strides = [1, 1]} : vector<16x64xf32> to vector<16x32xf32>
    %303 = vector.extract_strided_slice %301 {offsets = [0, 32], sizes = [16, 32], strides = [1, 1]} : vector<16x64xf32> to vector<16x32xf32>
    %304 = arith.addf %302, %303 : vector<16x32xf32>
    %305 = arith.index_cast %c5_i32_188 : i32 to index
    %c0_201 = arith.constant 0 : index
    %c0_202 = arith.constant 0 : index
    %306 = vector.load %arg13[%305, %c0_201, %c0_202] : memref<8x16x32xf32, #tpu.memory_space<vmem>>, vector<1x16x32xf32>
    %307 = vector.shape_cast %306 : vector<1x16x32xf32> to vector<16x32xf32>
    %308 = vector.shape_cast %304 : vector<16x32xf32> to vector<1x16x32xf32>
    tpu.vector_store %arg13[%305, %c0_201, %c0_202], %308 {strides = array<i32>} : memref<8x16x32xf32, #tpu.memory_space<vmem>>, vector<1x16x32xf32>,
    %c6_i32_203 = arith.constant 6 : i32
    %309 = arith.index_cast %c6_i32_203 : i32 to index
    %c0_204 = arith.constant 0 : index
    %c0_205 = arith.constant 0 : index
    %310 = vector.load %arg10[%309, %c0_204, %c0_205] : memref<8x16x64xf32, #tpu.memory_space<vmem>>, vector<1x16x64xf32>
    %311 = vector.shape_cast %310 : vector<1x16x64xf32> to vector<16x64xf32>
    %c0_206 = arith.constant 0 : index
    %c0_207 = arith.constant 0 : index
    %312 = vector.load %arg14[%c0_206, %c0_207] : memref<16x64xf32, #tpu.memory_space<vmem>>, vector<16x64xf32>
    %313 = arith.mulf %311, %312 : vector<16x64xf32>
    %314 = arith.index_cast %c6_i32_203 : i32 to index
    %c0_208 = arith.constant 0 : index
    %c0_209 = arith.constant 0 : index
    %315 = vector.load %arg9[%314, %c0_208, %c0_209] : memref<8x16x64xf32, #tpu.memory_space<vmem>>, vector<1x16x64xf32>
    %316 = vector.shape_cast %315 : vector<1x16x64xf32> to vector<16x64xf32>
    %317 = arith.addf %313, %316 : vector<16x64xf32>
    %c0_210 = arith.constant 0 : index
    %c0_211 = arith.constant 0 : index
    %318 = vector.load %arg14[%c0_210, %c0_211] : memref<16x64xf32, #tpu.memory_space<vmem>>, vector<16x64xf32>
    tpu.vector_store %arg14[%c0_210, %c0_211], %317 {strides = array<i32>} : memref<16x64xf32, #tpu.memory_space<vmem>>, vector<16x64xf32>,
    %319 = arith.index_cast %c6_i32_203 : i32 to index
    %c0_212 = arith.constant 0 : index
    %c0_213 = arith.constant 0 : index
    %320 = vector.load %arg12[%319, %c0_212, %c0_213] : memref<8x16x64xf32, #tpu.memory_space<vmem>>, vector<1x16x64xf32>
    %321 = vector.shape_cast %320 : vector<1x16x64xf32> to vector<16x64xf32>
    %322 = arith.addf %317, %321 : vector<16x64xf32>
    %323 = arith.index_cast %c6_i32_203 : i32 to index
    %c0_214 = arith.constant 0 : index
    %c0_215 = arith.constant 0 : index
    %324 = vector.load %arg11[%323, %c0_214, %c0_215] : memref<8x16x64xf32, #tpu.memory_space<vmem>>, vector<1x16x64xf32>
    %325 = vector.shape_cast %324 : vector<1x16x64xf32> to vector<16x64xf32>
    %326 = arith.mulf %322, %325 : vector<16x64xf32>
    %327 = vector.extract_strided_slice %326 {offsets = [0, 0], sizes = [16, 32], strides = [1, 1]} : vector<16x64xf32> to vector<16x32xf32>
    %328 = vector.extract_strided_slice %326 {offsets = [0, 32], sizes = [16, 32], strides = [1, 1]} : vector<16x64xf32> to vector<16x32xf32>
    %329 = arith.addf %327, %328 : vector<16x32xf32>
    %330 = arith.index_cast %c6_i32_203 : i32 to index
    %c0_216 = arith.constant 0 : index
    %c0_217 = arith.constant 0 : index
    %331 = vector.load %arg13[%330, %c0_216, %c0_217] : memref<8x16x32xf32, #tpu.memory_space<vmem>>, vector<1x16x32xf32>
    %332 = vector.shape_cast %331 : vector<1x16x32xf32> to vector<16x32xf32>
    %333 = vector.shape_cast %329 : vector<16x32xf32> to vector<1x16x32xf32>
    tpu.vector_store %arg13[%330, %c0_216, %c0_217], %333 {strides = array<i32>} : memref<8x16x32xf32, #tpu.memory_space<vmem>>, vector<1x16x32xf32>,
    %c7_i32_218 = arith.constant 7 : i32
    %334 = arith.index_cast %c7_i32_218 : i32 to index
    %c0_219 = arith.constant 0 : index
    %c0_220 = arith.constant 0 : index
    %335 = vector.load %arg10[%334, %c0_219, %c0_220] : memref<8x16x64xf32, #tpu.memory_space<vmem>>, vector<1x16x64xf32>
    %336 = vector.shape_cast %335 : vector<1x16x64xf32> to vector<16x64xf32>
    %c0_221 = arith.constant 0 : index
    %c0_222 = arith.constant 0 : index
    %337 = vector.load %arg14[%c0_221, %c0_222] : memref<16x64xf32, #tpu.memory_space<vmem>>, vector<16x64xf32>
    %338 = arith.mulf %336, %337 : vector<16x64xf32>
    %339 = arith.index_cast %c7_i32_218 : i32 to index
    %c0_223 = arith.constant 0 : index
    %c0_224 = arith.constant 0 : index
    %340 = vector.load %arg9[%339, %c0_223, %c0_224] : memref<8x16x64xf32, #tpu.memory_space<vmem>>, vector<1x16x64xf32>
    %341 = vector.shape_cast %340 : vector<1x16x64xf32> to vector<16x64xf32>
    %342 = arith.addf %338, %341 : vector<16x64xf32>
    %c0_225 = arith.constant 0 : index
    %c0_226 = arith.constant 0 : index
    %343 = vector.load %arg14[%c0_225, %c0_226] : memref<16x64xf32, #tpu.memory_space<vmem>>, vector<16x64xf32>
    tpu.vector_store %arg14[%c0_225, %c0_226], %342 {strides = array<i32>} : memref<16x64xf32, #tpu.memory_space<vmem>>, vector<16x64xf32>,
    %344 = arith.index_cast %c7_i32_218 : i32 to index
    %c0_227 = arith.constant 0 : index
    %c0_228 = arith.constant 0 : index
    %345 = vector.load %arg12[%344, %c0_227, %c0_228] : memref<8x16x64xf32, #tpu.memory_space<vmem>>, vector<1x16x64xf32>
    %346 = vector.shape_cast %345 : vector<1x16x64xf32> to vector<16x64xf32>
    %347 = arith.addf %342, %346 : vector<16x64xf32>
    %348 = arith.index_cast %c7_i32_218 : i32 to index
    %c0_229 = arith.constant 0 : index
    %c0_230 = arith.constant 0 : index
    %349 = vector.load %arg11[%348, %c0_229, %c0_230] : memref<8x16x64xf32, #tpu.memory_space<vmem>>, vector<1x16x64xf32>
    %350 = vector.shape_cast %349 : vector<1x16x64xf32> to vector<16x64xf32>
    %351 = arith.mulf %347, %350 : vector<16x64xf32>
    %352 = vector.extract_strided_slice %351 {offsets = [0, 0], sizes = [16, 32], strides = [1, 1]} : vector<16x64xf32> to vector<16x32xf32>
    %353 = vector.extract_strided_slice %351 {offsets = [0, 32], sizes = [16, 32], strides = [1, 1]} : vector<16x64xf32> to vector<16x32xf32>
    %354 = arith.addf %352, %353 : vector<16x32xf32>
    %355 = arith.index_cast %c7_i32_218 : i32 to index
    %c0_231 = arith.constant 0 : index
    %c0_232 = arith.constant 0 : index
    %356 = vector.load %arg13[%355, %c0_231, %c0_232] : memref<8x16x32xf32, #tpu.memory_space<vmem>>, vector<1x16x32xf32>
    %357 = vector.shape_cast %356 : vector<1x16x32xf32> to vector<16x32xf32>
    %358 = vector.shape_cast %354 : vector<16x32xf32> to vector<1x16x32xf32>
    tpu.vector_store %arg13[%355, %c0_231, %c0_232], %358 {strides = array<i32>} : memref<8x16x32xf32, #tpu.memory_space<vmem>>, vector<1x16x32xf32>,
    %c8_i32_233 = arith.constant 8 : i32
    %c0_234 = arith.constant 0 : index
    %c0_235 = arith.constant 0 : index
    %c0_236 = arith.constant 0 : index
    %359 = vector.load %arg13[%c0_234, %c0_235, %c0_236] : memref<8x16x32xf32, #tpu.memory_space<vmem>>, vector<8x16x32xf32>
    %360 = vector.shape_cast %359 : vector<8x16x32xf32> to vector<128x32xf32>
    %cst_237 = arith.constant dense<0.000000e+00> : vector<128xf32>
    %361 = vector.multi_reduction <add>, %360, %cst_237 [1] : vector<128x32xf32> to vector<128xf32>
    %362 = vector.shape_cast %361 : vector<128xf32> to vector<128x1xf32>
    %cst_238 = arith.constant 3.200000e+01 : f32
    %363 = vector.broadcast %cst_238 : f32 to vector<128x1xf32>
    %364 = arith.divf %362, %363 : vector<128x1xf32>
    %365 = vector.broadcast %364 : vector<128x1xf32> to vector<128x32xf32>
    %366 = arith.subf %360, %365 : vector<128x32xf32>
    %367 = arith.mulf %366, %366 : vector<128x32xf32>
    %cst_239 = arith.constant dense<0.000000e+00> : vector<128xf32>
    %368 = vector.multi_reduction <add>, %367, %cst_239 [1] : vector<128x32xf32> to vector<128xf32>
    %369 = vector.shape_cast %368 : vector<128xf32> to vector<128x1xf32>
    %cst_240 = arith.constant 3.200000e+01 : f32
    %370 = vector.broadcast %cst_240 : f32 to vector<128x1xf32>
    %371 = arith.divf %369, %370 : vector<128x1xf32>
    %372 = vector.broadcast %364 : vector<128x1xf32> to vector<128x32xf32>
    %373 = arith.subf %360, %372 : vector<128x32xf32>
    %cst_241 = arith.constant 9.99999974E-6 : f32
    %374 = vector.broadcast %cst_241 : f32 to vector<128x1xf32>
    %375 = arith.addf %371, %374 : vector<128x1xf32>
    %376 = math.rsqrt %375 : vector<128x1xf32>
    %377 = vector.broadcast %376 : vector<128x1xf32> to vector<128x32xf32>
    %378 = arith.mulf %373, %377 : vector<128x32xf32>
    %c0_242 = arith.constant 0 : index
    %c0_243 = arith.constant 0 : index
    %379 = vector.load %arg4[%c0_242, %c0_243] : memref<1x32xf32, #tpu.memory_space<vmem>>, vector<1x32xf32>
    %380 = vector.broadcast %379 : vector<1x32xf32> to vector<128x32xf32>
    %381 = arith.mulf %378, %380 : vector<128x32xf32>
    %c0_244 = arith.constant 0 : index
    %c0_245 = arith.constant 0 : index
    %382 = vector.load %arg5[%c0_244, %c0_245] : memref<1x32xf32, #tpu.memory_space<vmem>>, vector<1x32xf32>
    %383 = vector.broadcast %382 : vector<1x32xf32> to vector<128x32xf32>
    %384 = arith.addf %381, %383 : vector<128x32xf32>
    %c0_246 = arith.constant 0 : index
    %c0_247 = arith.constant 0 : index
    %385 = vector.load %arg6[%c0_246, %c0_247] : memref<32x32xf32, #tpu.memory_space<vmem>>, vector<32x32xf32>
    %cst_248 = arith.constant dense<0.000000e+00> : vector<128x32xf32>
    %386 = tpu.matmul %384, %385, %cst_248 {dimension_numbers = #tpu.dot_dimension_numbers<[1], [0], [0], [1], [0, 0, 1, 1], [], []>} : vector<128x32xf32>, vector<32x32xf32>, vector<128x32xf32> -> vector<128x32xf32>
    %c0_249 = arith.constant 0 : index
    %c0_250 = arith.constant 0 : index
    %387 = vector.load %arg7[%c0_249, %c0_250] : memref<1x32xf32, #tpu.memory_space<vmem>>, vector<1x32xf32>
    %388 = vector.broadcast %387 : vector<1x32xf32> to vector<128x32xf32>
    %389 = arith.addf %386, %388 : vector<128x32xf32>
    %390 = vector.shape_cast %389 : vector<128x32xf32> to vector<8x16x32xf32>
    %c0_251 = arith.constant 0 : index
    %c0_252 = arith.constant 0 : index
    %c0_253 = arith.constant 0 : index
    %391 = vector.load %arg8[%c0_251, %c0_252, %c0_253] : memref<8x16x32xf32, #tpu.memory_space<vmem>>, vector<8x16x32xf32>
    tpu.vector_store %arg8[%c0_251, %c0_252, %c0_253], %390 {strides = array<i32>} : memref<8x16x32xf32, #tpu.memory_space<vmem>>, vector<8x16x32xf32>,
    return
  }
  func.func @transform_0(%arg0: i32) -> (i32, i32, i32) {
    %c0_i32 = arith.constant 0 : i32
    %c0_i32_0 = arith.constant 0 : i32
    %c0_i32_1 = arith.constant 0 : i32
    return %c0_i32, %arg0, %c0_i32_0 : i32, i32, i32
  }
  func.func @transform_1(%arg0: i32) -> (i32, i32) {
    %c0_i32 = arith.constant 0 : i32
    %c0_i32_0 = arith.constant 0 : i32
    %c0_i32_1 = arith.constant 0 : i32
    return %c0_i32, %c0_i32_0 : i32, i32
  }
  func.func @transform_2(%arg0: i32) -> (i32, i32) {
    %c0_i32 = arith.constant 0 : i32
    %c0_i32_0 = arith.constant 0 : i32
    %c0_i32_1 = arith.constant 0 : i32
    return %c0_i32, %c0_i32_0 : i32, i32
  }
  func.func @transform_3(%arg0: i32) -> (i32, i32) {
    %c0_i32 = arith.constant 0 : i32
    %c0_i32_0 = arith.constant 0 : i32
    %c0_i32_1 = arith.constant 0 : i32
    return %c0_i32, %c0_i32_0 : i32, i32
  }
  func.func @transform_4(%arg0: i32) -> (i32, i32) {
    %c0_i32 = arith.constant 0 : i32
    %c0_i32_0 = arith.constant 0 : i32
    %c0_i32_1 = arith.constant 0 : i32
    return %c0_i32, %c0_i32_0 : i32, i32
  }
  func.func @transform_5(%arg0: i32) -> (i32, i32) {
    %c0_i32 = arith.constant 0 : i32
    %c0_i32_0 = arith.constant 0 : i32
    %c0_i32_1 = arith.constant 0 : i32
    return %c0_i32, %c0_i32_0 : i32, i32
  }
  func.func @transform_6(%arg0: i32) -> (i32, i32) {
    %c0_i32 = arith.constant 0 : i32
    %c0_i32_0 = arith.constant 0 : i32
    %c0_i32_1 = arith.constant 0 : i32
    return %c0_i32, %c0_i32_0 : i32, i32
  }
  func.func @transform_7(%arg0: i32) -> (i32, i32, i32) {
    %c0_i32 = arith.constant 0 : i32
    %c0_i32_0 = arith.constant 0 : i32
    %c0_i32_1 = arith.constant 0 : i32
    return %c0_i32, %arg0, %c0_i32_0 : i32, i32, i32
  }
}

</mosaic_0001>

<bundles_post_ra>
// kernel: tpu_custom_call.1
= control target key start
LH: loop header
LB: loop body
LE: loop exit
PB: predicated region body
PF: predicated region fallthrough
CT: control target
= control target key end

     0   :  { %12 = vsyncpa [#allocation9], 0  ;;  %s2747_s0 = inlined_call_operand.hbm [shape: f32[8,16,32], index: 0, kind: input, shape index: {}]   ;;  %s2748_s1 = inlined_call_operand.hbm [shape: f32[32,192], index: 1, kind: input, shape index: {}]   ;;  %s2749_s2 = inlined_call_operand.vmem [shape: f32[1,192], index: 2, kind: input, shape index: {}]   ;;  %s2750_s3 = inlined_call_operand.vmem [shape: f32[1,32], index: 3, kind: input, shape index: {}]   ;;  %s2751_s4 = inlined_call_operand.vmem [shape: f32[1,32], index: 4, kind: input, shape index: {}]   ;;  %s2752_s5 = inlined_call_operand.hbm [shape: f32[32,32], index: 5, kind: input, shape index: {}]   ;;  %s2753_s6 = inlined_call_operand.vmem [shape: f32[1,32], index: 6, kind: input, shape index: {}]   ;;  %s2754_s7 = inlined_call_operand.hbm [shape: f32[8,16,32], index: 7, kind: output, shape index: {}]  }
   0x1   :  { %13 = vsyncpa [#allocation12], 0 }
   0x2   :  { %14 = vsyncpa [#allocation10], 0  ;;  %s1967_s24 = smov [#allocation11]  }
   0x3   :  { %s32_s25 = sshll.u32 %s1967_s24, 4  ;;  %s33_s25 = int_to_ptr.vmem [resolvable:$true] %s32_s25 }
   0x4   :  { %s1889_s26 = scalar_lea.vmem %s33_s25, 1024  ;;  %p1894_p1 = scmp.lt.s32.totalorder %s33_s25, %s33_s25 }
   0x5   :  { %p1890_p0 = scmp.ne.s32.totalorder %s33_s25, %s1889_s26  ;;  %p1895_p2 = scmp.lt.s32.totalorder %s1889_s26, %s1889_s26 }
   0x7   :  { %p1896_p3 = por %p1895_p2, %p1894_p1 }
   0x9   :  { %p1897_p4 = pnand %p1896_p3, %p1890_p0 }
   0xb   :  { %1900 = shalt.err (!%p1897_p4)
}
   0xc   :  { %s1968_s27 = smov 256   ;;  %s1969_s28 = smov 16  }
   0xd   :  { %38 = dma.hbm_to_vmem [thread:$0]  %s2748_s1, 1024, %s33_s25, [#allocation12], %s1968_s27, %s1968_s27, %s1969_s28  }
   0xe   :  { %s1970_s8 = smov [#allocation8]  }
   0xf   :  { %s20_s9 = sshll.u32 %s1970_s8, 4  ;;  %s21_s9 = int_to_ptr.vmem [resolvable:$true] %s20_s9 }
  0x10   :  { %s1909_s10 = scalar_lea.vmem %s21_s9, 2048  ;;  %p1914_p6 = scmp.lt.s32.totalorder %s21_s9, %s21_s9 }
  0x11   :  { %p1910_p5 = scmp.ne.s32.totalorder %s21_s9, %s1909_s10  ;;  %p1915_p7 = scmp.lt.s32.totalorder %s1909_s10, %s1909_s10 }
  0x13   :  { %p1916_p8 = por %p1915_p7, %p1914_p6 }
  0x15   :  { %p1917_p9 = pnand %p1916_p8, %p1910_p5 }
  0x17   :  { %1920 = shalt.err (!%p1917_p9)
}
  0x18   :  { %s1971_s11 = smov 128   ;;  %s1972_s12 = smov 8  }
  0x19   :  { %26 = dma.hbm_to_vmem [thread:$0]  %s2747_s0, 2048, %s21_s9, [#allocation9], %s1971_s11, %s1971_s11, %s1972_s12  }
  0x1a   :  { %s1973_s1 = smov [#allocation13]  }
  0x1b   :  { %s50_s15 = sshll.u32 %s1973_s1, 4  ;;  %s51_s15 = int_to_ptr.vmem [resolvable:$true] %s50_s15 }
  0x1c   :  { %s1929_s16 = scalar_lea.vmem %s51_s15, 512  ;;  %p1934_p11 = scmp.lt.s32.totalorder %s51_s15, %s51_s15 }
  0x1d   :  { %p1930_p10 = scmp.ne.s32.totalorder %s51_s15, %s1929_s16  ;;  %p1935_p12 = scmp.lt.s32.totalorder %s1929_s16, %s1929_s16 }
  0x1f   :  { %p1936_p13 = por %p1935_p12, %p1934_p11 }
  0x21   :  { %p1937_p0 = pnand %p1936_p13, %p1930_p10 }
  0x23   :  { %1940 = shalt.err (!%p1937_p0)
}
  0x24   :  { %56 = dma.hbm_to_vmem [thread:$0]  %s2752_s5, 512, %s51_s15, [#allocation12], %s1971_s11, %s1971_s11, %s1972_s12  }
  0x25   :  { %1961 = dma.done.wait [#allocation9], 2048  }
  0x26   :  { %1962 = vsyncadd [#allocation9], 4294965248 }
  0x27   :  { %1963 = dma.done.wait [#allocation12], 1536  }
  0x28   :  { %1964 = vsyncadd [#allocation12], 4294965760  ;;  %v1974_v0 = vmov 0.0   ;;  %v91_v1 = vld [vmem:[#allocation11 + $0x38] sm:$0xff]  ;;  %v90_v2 = vld [vmem:[#allocation11 + $0x30] sm:$0xff]  ;;  %vm104_vm0 = vcmask 261120   ;;  %v94_v25 = vlaneseq }
  0x29   :  { %217 = vmatprep.mubr.f32.mxu0 %v1974_v0  ;;  %289 = vmatprep.mubr.f32.mxu1 %v1974_v0  ;;  %v89_v3 = vld [vmem:[#allocation11 + $0x28] sm:$0xff]  ;;  %v88_v4 = vld [vmem:[#allocation11 + $0x20] sm:$0xff]  ;;  %v87_v5 = vld [vmem:[#allocation11 + $0x18] sm:$0xff]  ;;  %vm554_vm1 = vcmask 523264   ;;  %s1976_s19 = smov 96  }
  0x2a   :  { %177 = vmatprep.subr.mxu0 %v91_v1  ;;  %1702 = vmatprep.subr.mxu1 %v91_v1  ;;  %v86_v6 = vld [vmem:[#allocation11 + $0x10] sm:$0xff]  ;;  %v85_v7 = vld [vmem:[#allocation11 + $0x8] sm:$0xff]  ;;  %v84_v8 = vld [vmem:[#allocation11] sm:$0xff]  ;;  %667 = vst.msk [vmem:[#allocation7] sm:$0xff] %vm554_vm1, %v1974_v0  ;;  %v95_v26 = vshrl.u32 %v94_v25, 7 }
  0x2b   :  { %178 = vmatpush1.msra.mxu0 %v90_v2  ;;  %1706 = vmatpush1.msra.mxu1 %v90_v2  ;;  %v68_v9 = vld [vmem:[#allocation8] sm:$0xff]  ;;  %v69_v11 = vld [vmem:[#allocation8 + $0x8] sm:$0xff]  ;;  %v70_v13 = vld [vmem:[#allocation8 + $0x10] sm:$0xff]  ;;  %668 = vst.msk [vmem:[#allocation7 + $0x8] sm:$0xff] %vm554_vm1, %v1974_v0 }
  0x2c   :  { %179 = vmatprep.subr.mxu0 %v89_v3  ;;  %1703 = vmatprep.subr.mxu1 %v89_v3  ;;  %v80_v10 = vld [vmem:[#allocation8 + $0x60] sm:$0xff]  ;;  %v81_v12 = vld [vmem:[#allocation8 + $0x68] sm:$0xff]  ;;  %v82_v14 = vld [vmem:[#allocation8 + $0x70] sm:$0xff]  ;;  %v96_v27 = vsub.s32 0, %v95_v26  ;;  %v100_v29 = vsub.s32 1, %v95_v26 }
  0x2d   :  { %180 = vmatpush1.msra.mxu0 %v88_v4  ;;  %1707 = vmatpush1.msra.mxu1 %v88_v4  ;;  %v71_v15 = vld [vmem:[#allocation8 + $0x18] sm:$0xff]  ;;  %v72_v17 = vld [vmem:[#allocation8 + $0x20] sm:$0xff]  ;;  %v73_v18 = vld [vmem:[#allocation8 + $0x28] sm:$0xff] }
  0x2e   :  { %181 = vmatprep.subr.mxu0 %v87_v5  ;;  %1704 = vmatprep.subr.mxu1 %v87_v5  ;;  %v83_v16 = vld [vmem:[#allocation8 + $0x78] sm:$0xff]  ;;  %v74_v19 = vld [vmem:[#allocation8 + $0x30] sm:$0xff]  ;;  %v76_v21 = vld [vmem:[#allocation8 + $0x40] sm:$0xff] }
  0x2f   :  { %182 = vmatpush1.msra.mxu0 %v86_v6  ;;  %1708 = vmatpush1.msra.mxu1 %v86_v6  ;;  %v75_v20 = vld [vmem:[#allocation8 + $0x38] sm:$0xff]  ;;  %v77_v22 = vld [vmem:[#allocation8 + $0x48] sm:$0xff]  ;;  %v78_v23 = vld [vmem:[#allocation8 + $0x50] sm:$0xff] }
  0x30   :  { %183 = vmatprep.subr.mxu0 %v85_v7  ;;  %1705 = vmatprep.subr.mxu1 %v85_v7  ;;  %v79_v24 = vld [vmem:[#allocation8 + $0x58] sm:$0xff]  ;;  %v92_v28 = vld [vmem:[%s2749_s2] sm:$0x3]  ;;  %s1975_s2 = smov 64  }
  0x31   :  { %184 = vmatpush1.msra.mxu0 %v84_v8  ;;  %1709 = vmatpush1.msra.mxu1 %v84_v8  ;;  %v2072_v30 = vrot.slane %v92_v28, %v96_v27  ;;  %v2074_v31 = vrot.slane %v92_v28, %v100_v29 }
  0x32   :  { %1583 = vmatmul.mubr.msk.f32.vlgmr.msra.gmra.mxu0 %vm104_vm0, %v68_v9  ;;  %1595 = vmatmul.mubr.msk.f32.vlgmr.msra.gmra.mxu1 %vm104_vm0, %v80_v10 }
  0x33   :  { %223 = vmatprep.mubr.f32.mxu0 %v1974_v0  ;;  %295 = vmatprep.mubr.f32.mxu1 %v1974_v0 }
  0x36   :  { %1584 = vmatmul.mubr.msk.f32.gmra.mxu0 %vm104_vm0, %v69_v11  ;;  %1596 = vmatmul.mubr.msk.f32.gmra.mxu1 %vm104_vm0, %v81_v12 }
  0x37   :  { %229 = vmatprep.mubr.f32.mxu0 %v1974_v0  ;;  %301 = vmatprep.mubr.f32.mxu1 %v1974_v0 }
  0x3a   :  { %1585 = vmatmul.mubr.msk.f32.gmra.mxu0 %vm104_vm0, %v70_v13  ;;  %1597 = vmatmul.mubr.msk.f32.gmra.mxu1 %vm104_vm0, %v82_v14 }
  0x3b   :  { %235 = vmatprep.mubr.f32.mxu0 %v1974_v0  ;;  %307 = vmatprep.mubr.f32.mxu1 %v1974_v0 }
  0x3e   :  { %1586 = vmatmul.mubr.msk.f32.gmra.mxu0 %vm104_vm0, %v71_v15  ;;  %1598 = vmatmul.mubr.msk.f32.gmra.mxu1 %vm104_vm0, %v83_v16 }
  0x3f   :  { %241 = vmatprep.mubr.f32.mxu0 %v1974_v0 }
  0x42   :  { %1587 = vmatmul.mubr.msk.f32.gmra.mxu0 %vm104_vm0, %v72_v17 }
  0x43   :  { %247 = vmatprep.mubr.f32.mxu0 %v1974_v0 }
  0x46   :  { %1588 = vmatmul.mubr.msk.f32.gmra.mxu0 %vm104_vm0, %v73_v18 }
  0x47   :  { %253 = vmatprep.mubr.f32.mxu0 %v1974_v0 }
  0x4a   :  { %1589 = vmatmul.mubr.msk.f32.gmra.mxu0 %vm104_vm0, %v74_v19 }
  0x4b   :  { %259 = vmatprep.mubr.f32.mxu0 %v1974_v0 }
  0x4e   :  { %1590 = vmatmul.mubr.msk.f32.gmra.mxu0 %vm104_vm0, %v75_v20 }
  0x4f   :  { %265 = vmatprep.mubr.f32.mxu0 %v1974_v0 }
  0x52   :  { %1591 = vmatmul.mubr.msk.f32.gmra.mxu0 %vm104_vm0, %v76_v21 }
  0x53   :  { %271 = vmatprep.mubr.f32.mxu0 %v1974_v0 }
  0x56   :  { %1592 = vmatmul.mubr.msk.f32.gmra.mxu0 %vm104_vm0, %v77_v22 }
  0x57   :  { %277 = vmatprep.mubr.f32.mxu0 %v1974_v0 }
  0x5a   :  { %1593 = vmatmul.mubr.msk.f32.gmra.mxu0 %vm104_vm0, %v78_v23 }
  0x5b   :  { %283 = vmatprep.mubr.f32.mxu0 %v1974_v0 }
  0x5e   :  { %1594 = vmatmul.mubr.msk.f32.gmra.mxu0 %vm104_vm0, %v79_v24 }
  0xf2   :  { %v219_v32 = vpop.f32.mrf.mxu0  ;;  %v291_v33 = vpop.f32.mrf.mxu1 }
  0xf3   :  { %v2077_v34 = vadd.f32 %v219_v32, %v2072_v30  ;;  %v2080_v35 = vadd.f32 %v291_v33, %v2072_v30 }
  0xf4   :  { %v221_v36 = vpop.f32.mrf.mxu0  ;;  %v293_v37 = vpop.f32.mrf.mxu1 }
  0xf5   :  { %v1599_v38 = vmul.f32 -1.442695, %v2077_v34  ;;  %v1611_v39 = vmul.f32 -1.442695, %v2080_v35  ;;  %v222_v40 = vadd.f32 %v221_v36, %v2074_v31  ;;  %v294_v41 = vadd.f32 %v293_v37, %v2074_v31 }
  0xf6   :  { %v225_v42 = vpop.f32.mrf.mxu0  ;;  %v297_v43 = vpop.f32.mrf.mxu1 }
  0xf7   :  { %1721 = vpow2.f32 %v1599_v38  ;;  %v1615_v44 = vmul.f32 -1.442695, %v222_v40  ;;  %v1627_v45 = vmul.f32 -1.442695, %v294_v41  ;;  %v2087_v46 = vadd.f32 %v225_v42, %v2072_v30 }
  0xf8   :  { %1723 = vpow2.f32 %v1611_v39  ;;  %v2090_v47 = vadd.f32 %v297_v43, %v2072_v30  ;;  %v227_v48 = vpop.f32.mrf.mxu0  ;;  %v299_v49 = vpop.f32.mrf.mxu1 }
  0xf9   :  { %1725 = vpow2.f32 %v1615_v44  ;;  %v1600_v50 = vmul.f32 -1.442695, %v2087_v46  ;;  %v228_v51 = vadd.f32 %v227_v48, %v2074_v31  ;;  %v300_v52 = vadd.f32 %v299_v49, %v2074_v31 }
  0xfa   :  { %1727 = vpow2.f32 %v1627_v45  ;;  %v1612_v53 = vmul.f32 -1.442695, %v2090_v47  ;;  %v231_v54 = vpop.f32.mrf.mxu0  ;;  %v303_v55 = vpop.f32.mrf.mxu1 }
  0xfb   :  { %1729 = vpow2.f32 %v1600_v50  ;;  %v1616_v56 = vmul.f32 -1.442695, %v228_v51  ;;  %v1628_v57 = vmul.f32 -1.442695, %v300_v52  ;;  %v2097_v58 = vadd.f32 %v231_v54, %v2072_v30 }
  0xfc   :  { %1731 = vpow2.f32 %v1612_v53  ;;  %v2100_v59 = vadd.f32 %v303_v55, %v2072_v30  ;;  %v233_v60 = vpop.f32.mrf.mxu0  ;;  %v305_v61 = vpop.f32.mrf.mxu1 }
  0xfd   :  { %1733 = vpow2.f32 %v1616_v56  ;;  %v1601_v62 = vmul.f32 -1.442695, %v2097_v58  ;;  %v234_v63 = vadd.f32 %v233_v60, %v2074_v31  ;;  %v306_v1 = vadd.f32 %v305_v61, %v2074_v31 }
  0xfe   :  { %1735 = vpow2.f32 %v1628_v57  ;;  %v1613_v2 = vmul.f32 -1.442695, %v2100_v59  ;;  %v237_v3 = vpop.f32.mrf.mxu0  ;;  %v309_v4 = vpop.f32.mrf.mxu1 }
  0xff   :  { %1737 = vpow2.f32 %v1601_v62  ;;  %v1617_v5 = vmul.f32 -1.442695, %v234_v63  ;;  %v1629_v6 = vmul.f32 -1.442695, %v306_v1  ;;  %v2107_v7 = vadd.f32 %v237_v3, %v2072_v30 }
 0x100   :  { %1739 = vpow2.f32 %v1613_v2  ;;  %v2110_v8 = vadd.f32 %v309_v4, %v2072_v30  ;;  %v239_v9 = vpop.f32.mrf.mxu0  ;;  %v311_v10 = vpop.f32.mrf.mxu1 }
 0x101   :  { %1741 = vpow2.f32 %v1617_v5  ;;  %v1602_v11 = vmul.f32 -1.442695, %v2107_v7  ;;  %v240_v12 = vadd.f32 %v239_v9, %v2074_v31  ;;  %v312_v13 = vadd.f32 %v311_v10, %v2074_v31 }
 0x102   :  { %1743 = vpow2.f32 %v1629_v6  ;;  %v1614_v14 = vmul.f32 -1.442695, %v2110_v8  ;;  %v243_v15 = vpop.f32.mrf.mxu0 }
 0x103   :  { %1745 = vpow2.f32 %v1602_v11  ;;  %v1618_v16 = vmul.f32 -1.442695, %v240_v12  ;;  %v1630_v17 = vmul.f32 -1.442695, %v312_v13  ;;  %v2117_v53 = vadd.f32 %v243_v15, %v2072_v30 }
 0x104   :  { %v1722_v18 = vpop.eup %1721  ;;  %1747 = vpow2.f32 %v1614_v14  ;;  %v245_v19 = vpop.f32.mrf.mxu0 }
 0x105   :  { %v1724_v20 = vpop.eup %1723  ;;  %v362_v21 = vadd.f32 1.0, %v1722_v18  ;;  %1749 = vpow2.f32 %v1618_v16  ;;  %v246_v56 = vadd.f32 %v245_v19, %v2074_v31  ;;  %v1603_v10 = vmul.f32 -1.442695, %v2117_v53 }
 0x106   :  { %v1726_v22 = vpop.eup %1725  ;;  %v374_v23 = vadd.f32 1.0, %v1724_v20  ;;  %1751 = vpow2.f32 %v1630_v17  ;;  %v249_v24 = vpop.f32.mrf.mxu0 }
 0x107   :  { %v1728_v25 = vpop.eup %1727  ;;  %1753 = vrcp.f32 %v362_v21  ;;  %v474_v26 = vadd.f32 1.0, %v1726_v22  ;;  %v2121_v62 = vadd.f32 %v249_v24, %v2072_v30  ;;  %v1619_v14 = vmul.f32 -1.442695, %v246_v56 }
 0x108   :  { %v1730_v27 = vpop.eup %1729  ;;  %1755 = vrcp.f32 %v374_v23  ;;  %v486_v28 = vadd.f32 1.0, %v1728_v25  ;;  %v251_v29 = vpop.f32.mrf.mxu0 }
 0x109   :  { %v1732_v32 = vpop.eup %1731  ;;  %1757 = vrcp.f32 %v474_v26  ;;  %v363_v33 = vadd.f32 1.0, %v1730_v27  ;;  %v252_v63 = vadd.f32 %v251_v29, %v2074_v31  ;;  %v1604_v17 = vmul.f32 -1.442695, %v2121_v62 }
 0x10a   :  { %v1734_v36 = vpop.eup %1733  ;;  %1759 = vrcp.f32 %v486_v28  ;;  %v375_v37 = vadd.f32 1.0, %v1732_v32  ;;  %v255_v38 = vpop.f32.mrf.mxu0 }
 0x10b   :  { %v1736_v39 = vpop.eup %1735  ;;  %1761 = vrcp.f32 %v363_v33  ;;  %v475_v40 = vadd.f32 1.0, %v1734_v36  ;;  %v2125_v3 = vadd.f32 %v255_v38, %v2072_v30  ;;  %v1620_v18 = vmul.f32 -1.442695, %v252_v63 }
 0x10c   :  { %v1738_v41 = vpop.eup %1737  ;;  %1763 = vrcp.f32 %v375_v37  ;;  %v487_v42 = vadd.f32 1.0, %v1736_v39  ;;  %v257_v43 = vpop.f32.mrf.mxu0 }
 0x10d   :  { %v1740_v44 = vpop.eup %1739  ;;  %1765 = vrcp.f32 %v475_v40  ;;  %v364_v45 = vadd.f32 1.0, %v1738_v41  ;;  %v258_v4 = vadd.f32 %v257_v43, %v2074_v31  ;;  %v1605_v21 = vmul.f32 -1.442695, %v2125_v3 }
 0x10e   :  { %v1742_v48 = vpop.eup %1741  ;;  %1767 = vrcp.f32 %v487_v42  ;;  %v376_v49 = vadd.f32 1.0, %v1740_v44  ;;  %v261_v50 = vpop.f32.mrf.mxu0 }
 0x10f   :  { %v1744_v51 = vpop.eup %1743  ;;  %1769 = vrcp.f32 %v364_v45  ;;  %v476_v52 = vadd.f32 1.0, %v1742_v48  ;;  %v2130_v11 = vadd.f32 %v261_v50, %v2072_v30  ;;  %v1621_v22 = vmul.f32 -1.442695, %v258_v4 }
 0x110   :  { %v1746_v54 = vpop.eup %1745  ;;  %1771 = vrcp.f32 %v376_v49  ;;  %v488_v55 = vadd.f32 1.0, %v1744_v51  ;;  %v263_v57 = vpop.f32.mrf.mxu0 }
 0x111   :  { %v1748_v60 = vpop.eup %1747  ;;  %1773 = vrcp.f32 %v476_v52  ;;  %v365_v61 = vadd.f32 1.0, %v1746_v54  ;;  %v264_v19 = vadd.f32 %v263_v57, %v2074_v31  ;;  %v1606_v28 = vmul.f32 -1.442695, %v2130_v11 }
 0x112   :  { %v1750_v1 = vpop.eup %1749  ;;  %1775 = vrcp.f32 %v488_v55  ;;  %v377_v2 = vadd.f32 1.0, %v1748_v60  ;;  %v267_v5 = vpop.f32.mrf.mxu0 }
 0x113   :  { %v1752_v6 = vpop.eup %1751  ;;  %1777 = vrcp.f32 %v365_v61  ;;  %v477_v9 = vadd.f32 1.0, %v1750_v1  ;;  %v2139_v23 = vadd.f32 %v267_v5, %v2072_v30  ;;  %v1622_v39 = vmul.f32 -1.442695, %v264_v19 }
 0x114   :  { %v1754_v12 = vpop.eup %1753  ;;  %1779 = vrcp.f32 %v377_v2  ;;  %v489_v13 = vadd.f32 1.0, %v1752_v6  ;;  %v269_v15 = vpop.f32.mrf.mxu0 }
 0x115   :  { %v2132_v16 = vpop.eup %1755  ;;  %1781 = vrcp.f32 %v477_v9  ;;  %603 = vrot.lane.b32.xlu0 %v1754_v12, %s1975_s2  ;;  %v410_v26 = vmul.f32 %v1754_v12, %v2077_v34  ;;  %v270_v36 = vadd.f32 %v269_v15, %v2074_v31 }
 0x116   :  { %v1758_v20 = vpop.eup %1757  ;;  %1783 = vrcp.f32 %v489_v13  ;;  %v273_v24 = vpop.f32.mrf.mxu0  ;;  %v422_v32 = vmul.f32 %v2132_v16, %v2080_v35  ;;  %v1607_v35 = vmul.f32 -1.442695, %v2139_v23 }
 0x117   :  { %v1760_v25 = vpop.eup %1759  ;;  %v522_v27 = vsub.f32 1.0, %v1758_v20  ;;  %571 = vst.msk [vmem:[#allocation3] sm:$0xff] %vm554_vm1, %v1758_v20  ;;  %1785 = vpow2.f32 %v1603_v10  ;;  %v2151_v40 = vadd.f32 %v273_v24, %v2072_v30  ;;  %v1623_v55 = vmul.f32 -1.442695, %v270_v36 }
 0x118   :  { %v1762_v29 = vpop.eup %1761  ;;  %v534_v33 = vsub.f32 1.0, %v1760_v25  ;;  %583 = vst.msk [vmem:[#allocation3 + $0x60] sm:$0xff] %vm554_vm1, %v1760_v25  ;;  %1787 = vpow2.f32 %v1619_v14  ;;  %v275_v37 = vpop.f32.mrf.mxu0 }
 0x119   :  { %v2148_v38 = vpop.eup %1763  ;;  %v538_v34 = vmul.f32 %v522_v27, %v410_v26  ;;  %1789 = vpow2.f32 %v1604_v17  ;;  %605 = vrot.lane.b32.xlu0 %v1762_v29, %s1975_s2  ;;  %v276_v43 = vadd.f32 %v275_v37, %v2074_v31  ;;  %v411_v48 = vmul.f32 %v1762_v29, %v2087_v46  ;;  %v672_v29 = vld [vmem:[#allocation7] sm:$0xff] }
 0x11a   :  { %v1766_v41 = vpop.eup %1765  ;;  %v550_v42 = vmul.f32 %v534_v33, %v422_v32  ;;  %1791 = vpow2.f32 %v1620_v18  ;;  %v279_v44 = vpop.f32.mrf.mxu0  ;;  %v423_v52 = vmul.f32 %v2148_v38, %v2090_v47  ;;  %v1608_v60 = vmul.f32 -1.442695, %v2151_v40 }
 0x11b   :  { %v1768_v45 = vpop.eup %1767  ;;  %555 = vst.msk [vmem:[#allocation2] sm:$0xff] %vm554_vm1, %v538_v34  ;;  %v523_v49 = vsub.f32 1.0, %v1766_v41  ;;  %572 = vst.msk [vmem:[#allocation3 + $0x8] sm:$0xff] %vm554_vm1, %v1766_v41  ;;  %1793 = vpow2.f32 %v1605_v21  ;;  %v2160_v50 = vadd.f32 %v279_v44, %v2072_v30  ;;  %v1624_v61 = vmul.f32 -1.442695, %v276_v43  ;;  %v673_v44 = vld [vmem:[#allocation7 + $0x8] sm:$0xff] }
 0x11c   :  { %v1770_v51 = vpop.eup %1769  ;;  %567 = vst.msk [vmem:[#allocation2 + $0x60] sm:$0xff] %vm554_vm1, %v550_v42  ;;  %v535_v54 = vsub.f32 1.0, %v1768_v45  ;;  %584 = vst.msk [vmem:[#allocation3 + $0x68] sm:$0xff] %vm554_vm1, %v1768_v45  ;;  %1795 = vpow2.f32 %v1621_v22  ;;  %v281_v56 = vpop.f32.mrf.mxu0 }
 0x11d   :  { %v2166_v46 = vpop.eup %1771  ;;  %v539_v57 = vmul.f32 %v523_v49, %v411_v48  ;;  %1797 = vpow2.f32 %v1606_v28  ;;  %607 = vrot.lane.b32.xlu1 %v1770_v51, %s1975_s2  ;;  %v412_v2 = vmul.f32 %v1770_v51, %v2097_v58  ;;  %v282_v47 = vadd.f32 %v281_v56, %v2074_v31 }
 0x11e   :  { %v1774_v63 = vpop.eup %1773  ;;  %v551_v1 = vmul.f32 %v535_v54, %v423_v52  ;;  %1799 = vpow2.f32 %v1622_v39  ;;  %v285_v4 = vpop.f32.mrf.mxu0  ;;  %v1609_v9 = vmul.f32 -1.442695, %v2160_v50  ;;  %v424_v58 = vmul.f32 %v2166_v46, %v2100_v59 }
 0x11f   :  { %v1776_v5 = vpop.eup %1775  ;;  %556 = vst.msk [vmem:[#allocation2 + $0x8] sm:$0xff] %vm554_vm1, %v539_v57  ;;  %v524_v6 = vsub.f32 1.0, %v1774_v63  ;;  %573 = vst.msk [vmem:[#allocation3 + $0x10] sm:$0xff] %vm554_vm1, %v1774_v63  ;;  %1801 = vpow2.f32 %v1607_v35  ;;  %v2176_v10 = vadd.f32 %v285_v4, %v2072_v30  ;;  %v1625_v14 = vmul.f32 -1.442695, %v282_v47 }
 0x120   :  { %v1778_v12 = vpop.eup %1777  ;;  %568 = vst.msk [vmem:[#allocation2 + $0x68] sm:$0xff] %vm554_vm1, %v551_v1  ;;  %v536_v13 = vsub.f32 1.0, %v1776_v5  ;;  %585 = vst.msk [vmem:[#allocation3 + $0x70] sm:$0xff] %vm554_vm1, %v1776_v5  ;;  %1803 = vpow2.f32 %v1623_v55  ;;  %v287_v15 = vpop.f32.mrf.mxu0 }
 0x121   :  { %v2182_v17 = vpop.eup %1779  ;;  %v540_v18 = vmul.f32 %v524_v6, %v412_v2  ;;  %1805 = vpow2.f32 %v1608_v60  ;;  %v1610_v19 = vmul.f32 -1.442695, %v2176_v10  ;;  %609 = vrot.lane.b32.xlu1 %v1778_v12, %s1975_s2  ;;  %v288_v21 = vadd.f32 %v287_v15, %v2074_v31 }
 0x122   :  { %v1782_v30 = vpop.eup %1781  ;;  %v552_v20 = vmul.f32 %v536_v13, %v424_v58  ;;  %1807 = vpow2.f32 %v1624_v61  ;;  %v413_v22 = vmul.f32 %v1778_v12, %v2107_v7  ;;  %v425_v26 = vmul.f32 %v2182_v17, %v2110_v8 }
 0x123   :  { %v1784_v59 = vpop.eup %1783  ;;  %557 = vst.msk [vmem:[#allocation2 + $0x10] sm:$0xff] %vm554_vm1, %v540_v18  ;;  %v525_v24 = vsub.f32 1.0, %v1782_v30  ;;  %574 = vst.msk [vmem:[#allocation3 + $0x18] sm:$0xff] %vm554_vm1, %v1782_v30  ;;  %1809 = vpow2.f32 %v1609_v9  ;;  %v1626_v31 = vmul.f32 -1.442695, %v288_v21 }
 0x124   :  { %v1786_v25 = vpop.eup %1785  ;;  %569 = vst.msk [vmem:[#allocation2 + $0x70] sm:$0xff] %vm554_vm1, %v552_v20  ;;  %v537_v27 = vsub.f32 1.0, %v1784_v59  ;;  %586 = vst.msk [vmem:[#allocation3 + $0x78] sm:$0xff] %vm554_vm1, %v1784_v59  ;;  %1811 = vpow2.f32 %v1625_v14 }
 0x125   :  { %v1788_v28 = vpop.eup %1787  ;;  %v541_v32 = vmul.f32 %v525_v24, %v413_v22  ;;  %v366_v33 = vadd.f32 1.0, %v1786_v25  ;;  %1813 = vpow2.f32 %v1610_v19  ;;  %v687_v22 = vld [vmem:[#allocation3 + $0x60] sm:$0xff] }
 0x126   :  { %v1790_v7 = vpop.eup %1789  ;;  %v553_v36 = vmul.f32 %v537_v27, %v425_v26  ;;  %v478_v37 = vadd.f32 1.0, %v1788_v28  ;;  %1815 = vpow2.f32 %v1626_v31 }
 0x127   :  { %v1792_v34 = vpop.eup %1791  ;;  %v2194_v39 = vld [vmem:[#allocation3 + $0x70] sm:$0xff]  ;;  %558 = vst.msk [vmem:[#allocation2 + $0x18] sm:$0xff] %vm554_vm1, %v541_v32  ;;  %1817 = vrcp.f32 %v366_v33  ;;  %v367_v8 = vadd.f32 1.0, %v1790_v7 }
 0x128   :  { %v1794_v41 = vpop.eup %1793  ;;  %v674_v42 = vmul.f32 %v672_v29, %v2194_v39  ;;  %570 = vst.msk [vmem:[#allocation2 + $0x78] sm:$0xff] %vm554_vm1, %v553_v36  ;;  %1819 = vrcp.f32 %v478_v37  ;;  %v479_v35 = vadd.f32 1.0, %v1792_v34  ;;  %v694_v29 = vld [vmem:[#allocation2 + $0x60] sm:$0xff] }
 0x129   :  { %v1796_v43 = vpop.eup %1795  ;;  %1821 = vrcp.f32 %v367_v8  ;;  %v368_v45 = vadd.f32 1.0, %v1794_v41  ;;  %v2218_v8 = vld [vmem:[#allocation3 + $0x68] sm:$0xff] }
 0x12a   :  { %v1798_v48 = vpop.eup %1797  ;;  %1823 = vrcp.f32 %v479_v35  ;;  %v480_v49 = vadd.f32 1.0, %v1796_v43 }
 0x12b   :  { %v1800_v51 = vpop.eup %1799  ;;  %v2199_v52 = vld [vmem:[#allocation2 + $0x70] sm:$0xff]  ;;  %v2201_v54 = vld [vmem:[#allocation3 + $0x78] sm:$0xff]  ;;  %1825 = vrcp.f32 %v368_v45  ;;  %v369_v55 = vadd.f32 1.0, %v1798_v48  ;;  %v2227_v45 = vld [vmem:[#allocation2 + $0x68] sm:$0xff] }
 0x12c   :  { %v1802_v56 = vpop.eup %1801  ;;  %v679_v57 = vadd.f32 %v2199_v52, %v674_v42  ;;  %v675_v60 = vmul.f32 %v673_v44, %v2201_v54  ;;  %1827 = vrcp.f32 %v480_v49  ;;  %v481_v61 = vadd.f32 1.0, %v1800_v51 }
 0x12d   :  { %v1804_v63 = vpop.eup %1803  ;;  %1829 = vrcp.f32 %v369_v55  ;;  %v370_v1 = vadd.f32 1.0, %v1802_v56 }
 0x12e   :  { %v1806_v2 = vpop.eup %1805  ;;  %681 = vst.msk [vmem:[#allocation7] sm:$0xff] %vm554_vm1, %v679_v57  ;;  %684 = vst.msk [vmem:[#allocation5 + $0x70] sm:$0xff] %vm554_vm1, %v679_v57  ;;  %1831 = vrcp.f32 %v481_v61  ;;  %v482_v47 = vadd.f32 1.0, %v1804_v63 }
 0x12f   :  { %v1808_v4 = vpop.eup %1807  ;;  %v2207_v5 = vld [vmem:[#allocation2 + $0x78] sm:$0xff]  ;;  %1833 = vrcp.f32 %v370_v1  ;;  %v371_v6 = vadd.f32 1.0, %v1806_v2 }
 0x130   :  { %v1810_v9 = vpop.eup %1809  ;;  %v680_v12 = vadd.f32 %v2207_v5, %v675_v60  ;;  %1835 = vrcp.f32 %v482_v47  ;;  %v483_v58 = vadd.f32 1.0, %v1808_v4 }
 0x131   :  { %v1812_v13 = vpop.eup %1811  ;;  %1837 = vrcp.f32 %v371_v6  ;;  %v372_v14 = vadd.f32 1.0, %v1810_v9 }
 0x132   :  { %v1814_v15 = vpop.eup %1813  ;;  %682 = vst.msk [vmem:[#allocation7 + $0x8] sm:$0xff] %vm554_vm1, %v680_v12  ;;  %685 = vst.msk [vmem:[#allocation5 + $0x78] sm:$0xff] %vm554_vm1, %v680_v12  ;;  %1839 = vrcp.f32 %v483_v58  ;;  %v484_v18 = vadd.f32 1.0, %v1812_v13 }
 0x133   :  { %v1816_v19 = vpop.eup %1815  ;;  %1841 = vrcp.f32 %v372_v14  ;;  %v373_v30 = vadd.f32 1.0, %v1814_v15 }
 0x134   :  { %v1818_v20 = vpop.eup %1817  ;;  %1843 = vrcp.f32 %v484_v18  ;;  %v485_v21 = vadd.f32 1.0, %v1816_v19 }
 0x135   :  { %v1820_v59 = vpop.eup %1819  ;;  %v689_v24 = vld [vmem:[#allocation7] sm:$0xff]  ;;  %1845 = vrcp.f32 %v373_v30  ;;  %611 = vrot.lane.b32.xlu0 %v1818_v20, %s1975_s2  ;;  %v414_v27 = vmul.f32 %v1818_v20, %v2117_v53 }
 0x136   :  { %v1822_v25 = vpop.eup %1821  ;;  %v691_v26 = vmul.f32 %v689_v24, %v687_v22  ;;  %v526_v31 = vsub.f32 1.0, %v1820_v59  ;;  %575 = vst.msk [vmem:[#allocation3 + $0x20] sm:$0xff] %vm554_vm1, %v1820_v59  ;;  %1847 = vrcp.f32 %v485_v21 }
 0x137   :  { %v1824_v28 = vpop.eup %1823  ;;  %613 = vrot.lane.b32.xlu1 %v1822_v25, %s1975_s2  ;;  %v415_v36 = vmul.f32 %v1822_v25, %v2121_v62 }
 0x138   :  { %v1826_v32 = vpop.eup %1825  ;;  %v696_v33 = vadd.f32 %v694_v29, %v691_v26  ;;  %v542_v7 = vmul.f32 %v526_v31, %v414_v27  ;;  %v527_v37 = vsub.f32 1.0, %v1824_v28  ;;  %576 = vst.msk [vmem:[#allocation3 + $0x28] sm:$0xff] %vm554_vm1, %v1824_v28 }
 0x139   :  { %v1828_v34 = vpop.eup %1827  ;;  %v690_v53 = vld [vmem:[#allocation7 + $0x8] sm:$0xff]  ;;  %615 = vrot.lane.b32.xlu0 %v1826_v32, %s1975_s2  ;;  %v416_v62 = vmul.f32 %v1826_v32, %v2125_v3 }
 0x13a   :  { %v1830_v41 = vpop.eup %1829  ;;  %698 = vst.msk [vmem:[#allocation7] sm:$0xff] %vm554_vm1, %v696_v33  ;;  %701 = vst.msk [vmem:[#allocation5 + $0x60] sm:$0xff] %vm554_vm1, %v696_v33  ;;  %v692_v42 = vmul.f32 %v690_v53, %v2218_v8  ;;  %v543_v35 = vmul.f32 %v527_v37, %v415_v36  ;;  %v528_v43 = vsub.f32 1.0, %v1828_v34 }
 0x13b   :  { %559 = vst.msk [vmem:[#allocation2 + $0x20] sm:$0xff] %vm554_vm1, %v542_v7  ;;  %577 = vst.msk [vmem:[#allocation3 + $0x30] sm:$0xff] %vm554_vm1, %v1828_v34  ;;  %v1832_v44 = vpop.eup %1831  ;;  %617 = vrot.lane.b32.xlu1 %v1830_v41, %s1975_s2  ;;  %v417_v55 = vmul.f32 %v1830_v41, %v2130_v11 }
 0x13c   :  { %v1834_v48 = vpop.eup %1833  ;;  %v697_v49 = vadd.f32 %v2227_v45, %v692_v42  ;;  %560 = vst.msk [vmem:[#allocation2 + $0x28] sm:$0xff] %vm554_vm1, %v543_v35  ;;  %v544_v51 = vmul.f32 %v528_v43, %v416_v62  ;;  %v529_v56 = vsub.f32 1.0, %v1832_v44  ;;  %578 = vst.msk [vmem:[#allocation3 + $0x38] sm:$0xff] %vm554_vm1, %v1832_v44 }
 0x13d   :  { %v1836_v3 = vpop.eup %1835  ;;  %619 = vrot.lane.b32.xlu0 %v1834_v48, %s1975_s2  ;;  %v418_v61 = vmul.f32 %v1834_v48, %v2139_v23  ;;  %v2310_v43 = vld [vmem:[#allocation3 + $0x20] sm:$0xff] }
 0x13e   :  { %v1838_v57 = vpop.eup %1837  ;;  %699 = vst.msk [vmem:[#allocation7 + $0x8] sm:$0xff] %vm554_vm1, %v697_v49  ;;  %702 = vst.msk [vmem:[#allocation5 + $0x68] sm:$0xff] %vm554_vm1, %v697_v49  ;;  %v545_v60 = vmul.f32 %v529_v56, %v417_v55  ;;  %v530_v63 = vsub.f32 1.0, %v1836_v3 }
 0x13f   :  { %561 = vst.msk [vmem:[#allocation2 + $0x30] sm:$0xff] %vm554_vm1, %v544_v51  ;;  %579 = vst.msk [vmem:[#allocation3 + $0x40] sm:$0xff] %vm554_vm1, %v1836_v3  ;;  %v1840_v11 = vpop.eup %1839  ;;  %621 = vrot.lane.b32.xlu1 %v1838_v57, %s1975_s2  ;;  %v419_v47 = vmul.f32 %v1838_v57, %v2151_v40  ;;  %v2315_v51 = vld [vmem:[#allocation3 + $0x28] sm:$0xff] }
 0x140   :  { %v1842_v1 = vpop.eup %1841  ;;  %562 = vst.msk [vmem:[#allocation2 + $0x38] sm:$0xff] %vm554_vm1, %v545_v60  ;;  %v546_v2 = vmul.f32 %v530_v63, %v418_v61  ;;  %v531_v4 = vsub.f32 1.0, %v1840_v11  ;;  %580 = vst.msk [vmem:[#allocation3 + $0x48] sm:$0xff] %vm554_vm1, %v1840_v11  ;;  %v772_v61 = vld [vmem:[#allocation3 + $0x10] sm:$0xff] }
 0x141   :  { %v1844_v6 = vpop.eup %1843  ;;  %623 = vrot.lane.b32.xlu0 %v1842_v1, %s1975_s2  ;;  %v420_v12 = vmul.f32 %v1842_v1, %v2160_v50  ;;  %v779_v1 = vld [vmem:[#allocation2 + $0x10] sm:$0xff] }
 0x142   :  { %v1846_v9 = vpop.eup %1845  ;;  %563 = vst.msk [vmem:[#allocation2 + $0x40] sm:$0xff] %vm554_vm1, %v546_v2  ;;  %v547_v23 = vmul.f32 %v531_v4, %v419_v47  ;;  %v532_v58 = vsub.f32 1.0, %v1844_v6  ;;  %581 = vst.msk [vmem:[#allocation3 + $0x50] sm:$0xff] %vm554_vm1, %v1844_v6  ;;  %v2294_v33 = vld [vmem:[#allocation3 + $0x30] sm:$0xff]  ;;  %v2313_v49 = vld [vmem:[#allocation2 + $0x20] sm:$0xff] }
 0x143   :  { %v1848_v13 = vpop.eup %1847  ;;  %625 = vrot.lane.b32.xlu1 %v1846_v9, %s1975_s2  ;;  %v421_v14 = vmul.f32 %v1846_v9, %v2176_v10  ;;  %v706_v10 = vld [vmem:[#allocation7] sm:$0xff]  ;;  %v2299_v34 = vld [vmem:[#allocation3 + $0x38] sm:$0xff]  ;;  %v2319_v57 = vld [vmem:[#allocation2 + $0x28] sm:$0xff] }
 0x144   :  { %564 = vst.msk [vmem:[#allocation2 + $0x48] sm:$0xff] %vm554_vm1, %v547_v23  ;;  %v548_v40 = vmul.f32 %v532_v58, %v420_v12  ;;  %v533_v15 = vsub.f32 1.0, %v1848_v13  ;;  %582 = vst.msk [vmem:[#allocation3 + $0x58] sm:$0xff] %vm554_vm1, %v1848_v13  ;;  %v773_v2 = vld [vmem:[#allocation3 + $0x18] sm:$0xff]  ;;  %v788_v58 = vld [vmem:[#allocation3] sm:$0xff] }
 0x145   :  { %627 = vrot.lane.b32.xlu0 %v2132_v16, %s1975_s2  ;;  %v707_v20 = vld [vmem:[#allocation7 + $0x8] sm:$0xff]  ;;  %v780_v9 = vld [vmem:[#allocation2 + $0x18] sm:$0xff] }
 0x146   :  { %565 = vst.msk [vmem:[#allocation2 + $0x50] sm:$0xff] %vm554_vm1, %v548_v40  ;;  %v549_v50 = vmul.f32 %v533_v15, %v421_v14  ;;  %v2297_v37 = vld [vmem:[#allocation2 + $0x30] sm:$0xff]  ;;  %v794_v14 = vld [vmem:[#allocation2] sm:$0xff]  ;;  %v789_v15 = vld [vmem:[#allocation3 + $0x8] sm:$0xff] }
 0x147   :  { %629 = vrot.lane.b32.xlu1 %v2148_v38, %s1975_s2  ;;  %v2283_v26 = vld [vmem:[#allocation3 + $0x48] sm:$0xff]  ;;  %v2303_v35 = vld [vmem:[#allocation2 + $0x38] sm:$0xff] }
 0x148   :  { %566 = vst.msk [vmem:[#allocation2 + $0x58] sm:$0xff] %vm554_vm1, %v549_v50 }
 0x149   :  { %v2258_v18 = vld [vmem:[#allocation3 + $0x50] sm:$0xff]  ;;  %631 = vrot.lane.b32.xlu0 %v2166_v46, %s1975_s2  ;;  %v2281_v25 = vld [vmem:[#allocation2 + $0x40] sm:$0xff] }
 0x14a   :  { %v708_v16 = vmul.f32 %v706_v10, %v2258_v18 }
 0x14b   :  { %v2262_v19 = vld [vmem:[#allocation3 + $0x58] sm:$0xff]  ;;  %633 = vrot.lane.b32.xlu1 %v2182_v17, %s1975_s2  ;;  %v2278_v17 = vld [vmem:[#allocation3 + $0x40] sm:$0xff]  ;;  %v2287_v29 = vld [vmem:[#allocation2 + $0x48] sm:$0xff] }
 0x14c   :  { %v709_v21 = vmul.f32 %v707_v20, %v2262_v19 }
 0x14d   :  { %v2267_v30 = vld [vmem:[#allocation2 + $0x50] sm:$0xff] }
 0x14e   :  { %v713_v38 = vadd.f32 %v2267_v30, %v708_v16 }
 0x14f   :  { %v2271_v59 = vld [vmem:[#allocation2 + $0x58] sm:$0xff] }
 0x150   :  { %715 = vst.msk [vmem:[#allocation7] sm:$0xff] %vm554_vm1, %v713_v38  ;;  %718 = vst.msk [vmem:[#allocation5 + $0x50] sm:$0xff] %vm554_vm1, %v713_v38  ;;  %v714_v46 = vadd.f32 %v2271_v59, %v709_v21  ;;  %v795_v38 = vld [vmem:[#allocation2 + $0x8] sm:$0xff] }
 0x152   :  { %716 = vst.msk [vmem:[#allocation7 + $0x8] sm:$0xff] %vm554_vm1, %v714_v46  ;;  %719 = vst.msk [vmem:[#allocation5 + $0x58] sm:$0xff] %vm554_vm1, %v714_v46 }
 0x157   :  { %v723_v22 = vld [vmem:[#allocation7] sm:$0xff] }
 0x158   :  { %v725_v24 = vmul.f32 %v723_v22, %v2278_v17 }
 0x159   :  { %v724_v27 = vld [vmem:[#allocation7 + $0x8] sm:$0xff] }
 0x15a   :  { %v730_v31 = vadd.f32 %v2281_v25, %v725_v24  ;;  %v726_v28 = vmul.f32 %v724_v27, %v2283_v26 }
 0x15c   :  { %732 = vst.msk [vmem:[#allocation7] sm:$0xff] %vm554_vm1, %v730_v31  ;;  %735 = vst.msk [vmem:[#allocation5 + $0x40] sm:$0xff] %vm554_vm1, %v730_v31  ;;  %v731_v32 = vadd.f32 %v2287_v29, %v726_v28 }
 0x15e   :  { %733 = vst.msk [vmem:[#allocation7 + $0x8] sm:$0xff] %vm554_vm1, %v731_v32  ;;  %736 = vst.msk [vmem:[#allocation5 + $0x48] sm:$0xff] %vm554_vm1, %v731_v32 }
 0x163   :  { %v740_v7 = vld [vmem:[#allocation7] sm:$0xff] }
 0x164   :  { %v742_v36 = vmul.f32 %v740_v7, %v2294_v33 }
 0x165   :  { %v741_v53 = vld [vmem:[#allocation7 + $0x8] sm:$0xff] }
 0x166   :  { %v747_v41 = vadd.f32 %v2297_v37, %v742_v36  ;;  %v743_v42 = vmul.f32 %v741_v53, %v2299_v34 }
 0x168   :  { %749 = vst.msk [vmem:[#allocation7] sm:$0xff] %vm554_vm1, %v747_v41  ;;  %752 = vst.msk [vmem:[#allocation5 + $0x30] sm:$0xff] %vm554_vm1, %v747_v41  ;;  %v748_v62 = vadd.f32 %v2303_v35, %v743_v42 }
 0x16a   :  { %750 = vst.msk [vmem:[#allocation7 + $0x8] sm:$0xff] %vm554_vm1, %v748_v62  ;;  %753 = vst.msk [vmem:[#allocation5 + $0x38] sm:$0xff] %vm554_vm1, %v748_v62 }
 0x16f   :  { %v757_v44 = vld [vmem:[#allocation7] sm:$0xff] }
 0x170   :  { %v759_v48 = vmul.f32 %v757_v44, %v2310_v43 }
 0x171   :  { %v758_v55 = vld [vmem:[#allocation7 + $0x8] sm:$0xff] }
 0x172   :  { %v764_v56 = vadd.f32 %v2313_v49, %v759_v48  ;;  %v760_v3 = vmul.f32 %v758_v55, %v2315_v51 }
 0x174   :  { %766 = vst.msk [vmem:[#allocation7] sm:$0xff] %vm554_vm1, %v764_v56  ;;  %769 = vst.msk [vmem:[#allocation5 + $0x20] sm:$0xff] %vm554_vm1, %v764_v56  ;;  %v765_v60 = vadd.f32 %v2319_v57, %v760_v3 }
 0x176   :  { %767 = vst.msk [vmem:[#allocation7 + $0x8] sm:$0xff] %vm554_vm1, %v765_v60  ;;  %770 = vst.msk [vmem:[#allocation5 + $0x28] sm:$0xff] %vm554_vm1, %v765_v60 }
 0x17b   :  { %v774_v63 = vld [vmem:[#allocation7] sm:$0xff] }
 0x17c   :  { %v776_v11 = vmul.f32 %v774_v63, %v772_v61 }
 0x17d   :  { %v775_v47 = vld [vmem:[#allocation7 + $0x8] sm:$0xff] }
 0x17e   :  { %v781_v4 = vadd.f32 %v779_v1, %v776_v11  ;;  %v777_v6 = vmul.f32 %v775_v47, %v773_v2 }
 0x180   :  { %783 = vst.msk [vmem:[#allocation7] sm:$0xff] %vm554_vm1, %v781_v4  ;;  %786 = vst.msk [vmem:[#allocation5 + $0x10] sm:$0xff] %vm554_vm1, %v781_v4  ;;  %v782_v23 = vadd.f32 %v780_v9, %v777_v6 }
 0x182   :  { %784 = vst.msk [vmem:[#allocation7 + $0x8] sm:$0xff] %vm554_vm1, %v782_v23  ;;  %787 = vst.msk [vmem:[#allocation5 + $0x18] sm:$0xff] %vm554_vm1, %v782_v23 }
 0x187   :  { %v604_v12 = vpop.permute.xlu0 %603  ;;  %v790_v13 = vld [vmem:[#allocation7] sm:$0xff]  ;;  %v848_v11 = vld [vmem:[#allocation5 + $0x10] sm:$0xff] }
 0x188   :  { %651 = vst.msk [vmem:[#allocation4] sm:$0xff] %vm554_vm1, %v604_v12  ;;  %v792_v40 = vmul.f32 %v790_v13, %v788_v58 }
 0x189   :  { %v791_v50 = vld [vmem:[#allocation7 + $0x8] sm:$0xff]  ;;  %v849_v23 = vld [vmem:[#allocation5 + $0x18] sm:$0xff] }
 0x18a   :  { %v796_v10 = vadd.f32 %v794_v14, %v792_v40  ;;  %v793_v16 = vmul.f32 %v791_v50, %v789_v15 }
 0x18b   :  { %v606_v20 = vpop.permute.xlu0 %605 }
 0x18c   :  { %652 = vst.msk [vmem:[#allocation4 + $0x8] sm:$0xff] %vm554_vm1, %v606_v20  ;;  %798 = vst.msk [vmem:[#allocation7] sm:$0xff] %vm554_vm1, %v796_v10  ;;  %v797_v21 = vadd.f32 %v795_v38, %v793_v16 }
 0x18d   :  { %800 = vst.msk [vmem:[#allocation5] sm:$0xff] %vm554_vm1, %v796_v10  ;;  %802 = vst.msk [vmem:[#allocation7] sm:$0xff] %vm554_vm1, %v1974_v0 }
 0x18e   :  { %799 = vst.msk [vmem:[#allocation7 + $0x8] sm:$0xff] %vm554_vm1, %v797_v21  ;;  %801 = vst.msk [vmem:[#allocation5 + $0x8] sm:$0xff] %vm554_vm1, %v797_v21 }
 0x18f   :  { %v608_v46 = vpop.permute.xlu1 %607  ;;  %803 = vst.msk [vmem:[#allocation7 + $0x8] sm:$0xff] %vm554_vm1, %v1974_v0  ;;  %v820_v41 = vld [vmem:[#allocation4] sm:$0xff] }
 0x190   :  { %653 = vst.msk [vmem:[#allocation4 + $0x10] sm:$0xff] %vm554_vm1, %v608_v46 }
 0x193   :  { %v610_v22 = vpop.permute.xlu1 %609  ;;  %v821_v44 = vld [vmem:[#allocation4 + $0x8] sm:$0xff] }
 0x194   :  { %654 = vst.msk [vmem:[#allocation4 + $0x18] sm:$0xff] %vm554_vm1, %v610_v22  ;;  %v806_v24 = vld [vmem:[#allocation7] sm:$0xff] }
 0x195   :  { %v808_v27 = vmul.f32 %v806_v24, %v788_v58  ;;  %v816_v7 = vld [vmem:[#allocation5] sm:$0xff]  ;;  %v817_v42 = vld [vmem:[#allocation5 + $0x8] sm:$0xff] }
 0x196   :  { %v807_v31 = vld [vmem:[#allocation7 + $0x8] sm:$0xff] }
 0x197   :  { %v812_v28 = vadd.f32 %v808_v27, %v794_v14  ;;  %v809_v32 = vmul.f32 %v807_v31, %v789_v15  ;;  %v853_v6 = vld [vmem:[#allocation4 + $0x10] sm:$0xff]  ;;  %v883_v24 = vld [vmem:[#allocation5 + $0x28] sm:$0xff] }
 0x199   :  { %v818_v36 = vadd.f32 %v816_v7, %v812_v28  ;;  %814 = vst.msk [vmem:[#allocation7] sm:$0xff] %vm554_vm1, %v812_v28  ;;  %v813_v53 = vadd.f32 %v809_v32, %v795_v38  ;;  %v882_v38 = vld [vmem:[#allocation5 + $0x20] sm:$0xff] }
 0x19b   :  { %v2343_v62 = vmul.f32 %v820_v41, %v818_v36  ;;  %815 = vst.msk [vmem:[#allocation7 + $0x8] sm:$0xff] %vm554_vm1, %v813_v53  ;;  %v819_v0 = vadd.f32 %v817_v42, %v813_v53  ;;  %v854_v40 = vld [vmem:[#allocation4 + $0x18] sm:$0xff] }
 0x19d   :  { %826 = vrot.lane.b32.xlu0 %v2343_v62, %s1976_s19  ;;  %v2348_v48 = vmul.f32 %v821_v44, %v819_v0 }
 0x19f   :  { %828 = vrot.lane.b32.xlu1 %v2348_v48, %s1976_s19 }
 0x1a0   :  { %v838_v55 = vld [vmem:[#allocation7] sm:$0xff] }
 0x1a1   :  { %v840_v56 = vmul.f32 %v838_v55, %v772_v61  ;;  %v916_v55 = vld [vmem:[#allocation5 + $0x30] sm:$0xff] }
 0x1a2   :  { %v839_v3 = vld [vmem:[#allocation7 + $0x8] sm:$0xff] }
 0x1a3   :  { %v844_v60 = vadd.f32 %v840_v56, %v779_v1  ;;  %v841_v63 = vmul.f32 %v839_v3, %v773_v2 }
 0x1a5   :  { %v850_v47 = vadd.f32 %v848_v11, %v844_v60  ;;  %846 = vst.msk [vmem:[#allocation7] sm:$0xff] %vm554_vm1, %v844_v60  ;;  %v845_v4 = vadd.f32 %v841_v63, %v780_v9  ;;  %v917_v63 = vld [vmem:[#allocation5 + $0x38] sm:$0xff] }
 0x1a7   :  { %v612_v12 = vpop.permute.xlu0 %611  ;;  %v2353_v58 = vmul.f32 %v853_v6, %v850_v47  ;;  %847 = vst.msk [vmem:[#allocation7 + $0x8] sm:$0xff] %vm554_vm1, %v845_v4  ;;  %v851_v13 = vadd.f32 %v849_v23, %v845_v4 }
 0x1a8   :  { %655 = vst.msk [vmem:[#allocation4 + $0x20] sm:$0xff] %vm554_vm1, %v612_v12 }
 0x1a9   :  { %v614_v61 = vpop.permute.xlu1 %613  ;;  %859 = vrot.lane.b32.xlu0 %v2353_v58, %s1976_s19  ;;  %v2359_v1 = vmul.f32 %v854_v40, %v851_v13  ;;  %v950_v13 = vld [vmem:[#allocation5 + $0x40] sm:$0xff] }
 0x1aa   :  { %656 = vst.msk [vmem:[#allocation4 + $0x28] sm:$0xff] %vm554_vm1, %v614_v61 }
 0x1ab   :  { %v616_v2 = vpop.permute.xlu0 %615  ;;  %861 = vrot.lane.b32.xlu1 %v2359_v1, %s1976_s19 }
 0x1ac   :  { %657 = vst.msk [vmem:[#allocation4 + $0x30] sm:$0xff] %vm554_vm1, %v616_v2  ;;  %v872_v9 = vld [vmem:[#allocation7] sm:$0xff] }
 0x1ad   :  { %v618_v14 = vpop.permute.xlu1 %617  ;;  %v874_v15 = vmul.f32 %v872_v9, %v2310_v43  ;;  %v951_v9 = vld [vmem:[#allocation5 + $0x48] sm:$0xff] }
 0x1ae   :  { %658 = vst.msk [vmem:[#allocation4 + $0x38] sm:$0xff] %vm554_vm1, %v618_v14  ;;  %v873_v50 = vld [vmem:[#allocation7 + $0x8] sm:$0xff] }
 0x1af   :  { %v620_v10 = vpop.permute.xlu0 %619  ;;  %v878_v16 = vadd.f32 %v874_v15, %v2313_v49  ;;  %v875_v20 = vmul.f32 %v873_v50, %v2315_v51  ;;  %v887_v43 = vld [vmem:[#allocation4 + $0x20] sm:$0xff] }
 0x1b0   :  { %659 = vst.msk [vmem:[#allocation4 + $0x40] sm:$0xff] %vm554_vm1, %v620_v10 }
 0x1b1   :  { %v622_v21 = vpop.permute.xlu1 %621  ;;  %v884_v46 = vadd.f32 %v882_v38, %v878_v16  ;;  %880 = vst.msk [vmem:[#allocation7] sm:$0xff] %vm554_vm1, %v878_v16  ;;  %v879_v22 = vadd.f32 %v875_v20, %v2319_v57  ;;  %v888_v51 = vld [vmem:[#allocation4 + $0x28] sm:$0xff]  ;;  %v984_v20 = vld [vmem:[#allocation5 + $0x50] sm:$0xff] }
 0x1b2   :  { %660 = vst.msk [vmem:[#allocation4 + $0x48] sm:$0xff] %vm554_vm1, %v622_v21 }
 0x1b3   :  { %v624_v27 = vpop.permute.xlu0 %623  ;;  %v2373_v31 = vmul.f32 %v887_v43, %v884_v46  ;;  %881 = vst.msk [vmem:[#allocation7 + $0x8] sm:$0xff] %vm554_vm1, %v879_v22  ;;  %v885_v49 = vadd.f32 %v883_v24, %v879_v22  ;;  %v985_v22 = vld [vmem:[#allocation5 + $0x58] sm:$0xff] }
 0x1b4   :  { %661 = vst.msk [vmem:[#allocation4 + $0x50] sm:$0xff] %vm554_vm1, %v624_v27 }
 0x1b5   :  { %893 = vrot.lane.b32.xlu0 %v2373_v31, %s1976_s19  ;;  %v626_v28 = vpop.permute.xlu1 %625  ;;  %v2379_v32 = vmul.f32 %v888_v51, %v885_v49  ;;  %v922_v47 = vld [vmem:[#allocation4 + $0x38] sm:$0xff] }
 0x1b6   :  { %662 = vst.msk [vmem:[#allocation4 + $0x58] sm:$0xff] %vm554_vm1, %v626_v28 }
 0x1b7   :  { %v628_v57 = vpop.permute.xlu0 %627  ;;  %895 = vrot.lane.b32.xlu1 %v2379_v32, %s1976_s19  ;;  %v955_v2 = vld [vmem:[#allocation4 + $0x40] sm:$0xff] }
 0x1b8   :  { %663 = vst.msk [vmem:[#allocation4 + $0x60] sm:$0xff] %vm554_vm1, %v628_v57  ;;  %v906_v7 = vld [vmem:[#allocation7] sm:$0xff] }
 0x1b9   :  { %v630_v36 = vpop.permute.xlu1 %629  ;;  %v908_v53 = vmul.f32 %v906_v7, %v2294_v33  ;;  %v921_v33 = vld [vmem:[#allocation4 + $0x30] sm:$0xff]  ;;  %v956_v50 = vld [vmem:[#allocation4 + $0x48] sm:$0xff]  ;;  %v1018_v7 = vld [vmem:[#allocation5 + $0x60] sm:$0xff] }
 0x1ba   :  { %664 = vst.msk [vmem:[#allocation4 + $0x68] sm:$0xff] %vm554_vm1, %v630_v36  ;;  %v907_v41 = vld [vmem:[#allocation7 + $0x8] sm:$0xff] }
 0x1bb   :  { %v632_v42 = vpop.permute.xlu0 %631  ;;  %v912_v0 = vadd.f32 %v908_v53, %v2297_v37  ;;  %v909_v44 = vmul.f32 %v907_v41, %v2299_v34  ;;  %v989_v46 = vld [vmem:[#allocation4 + $0x50] sm:$0xff] }
 0x1bc   :  { %665 = vst.msk [vmem:[#allocation4 + $0x70] sm:$0xff] %vm554_vm1, %v632_v42  ;;  %v1019_v42 = vld [vmem:[#allocation5 + $0x68] sm:$0xff] }
 0x1bd   :  { %v634_v56 = vpop.permute.xlu1 %633  ;;  %v918_v3 = vadd.f32 %v916_v55, %v912_v0  ;;  %914 = vst.msk [vmem:[#allocation7] sm:$0xff] %vm554_vm1, %v912_v0  ;;  %v913_v60 = vadd.f32 %v909_v44, %v2303_v35  ;;  %v990_v27 = vld [vmem:[#allocation4 + $0x58] sm:$0xff] }
 0x1be   :  { %666 = vst.msk [vmem:[#allocation4 + $0x78] sm:$0xff] %vm554_vm1, %v634_v56 }
 0x1bf   :  { %v2393_v11 = vmul.f32 %v921_v33, %v918_v3  ;;  %915 = vst.msk [vmem:[#allocation7 + $0x8] sm:$0xff] %vm554_vm1, %v913_v60  ;;  %v919_v37 = vadd.f32 %v917_v63, %v913_v60  ;;  %v1023_v41 = vld [vmem:[#allocation4 + $0x60] sm:$0xff]  ;;  %v1052_v63 = vld [vmem:[#allocation5 + $0x70] sm:$0xff] }
 0x1c1   :  { %927 = vrot.lane.b32.xlu0 %v2393_v11, %s1976_s19  ;;  %v2398_v34 = vmul.f32 %v922_v47, %v919_v37  ;;  %v1024_v55 = vld [vmem:[#allocation4 + $0x68] sm:$0xff] }
 0x1c3   :  { %929 = vrot.lane.b32.xlu1 %v2398_v34, %s1976_s19 }
 0x1c4   :  { %v940_v4 = vld [vmem:[#allocation7] sm:$0xff] }
 0x1c5   :  { %v942_v35 = vmul.f32 %v940_v4, %v2278_v17  ;;  %v1057_v4 = vld [vmem:[#allocation4 + $0x70] sm:$0xff] }
 0x1c6   :  { %v941_v6 = vld [vmem:[#allocation7 + $0x8] sm:$0xff] }
 0x1c7   :  { %v946_v23 = vadd.f32 %v942_v35, %v2281_v25  ;;  %v943_v12 = vmul.f32 %v941_v6, %v2283_v26  ;;  %v1053_v35 = vld [vmem:[#allocation5 + $0x78] sm:$0xff] }
 0x1c9   :  { %v952_v40 = vadd.f32 %v950_v13, %v946_v23  ;;  %948 = vst.msk [vmem:[#allocation7] sm:$0xff] %vm554_vm1, %v946_v23  ;;  %v947_v61 = vadd.f32 %v943_v12, %v2287_v29  ;;  %v1058_v12 = vld [vmem:[#allocation4 + $0x78] sm:$0xff] }
 0x1cb   :  { %v2407_v14 = vmul.f32 %v955_v2, %v952_v40  ;;  %949 = vst.msk [vmem:[#allocation7 + $0x8] sm:$0xff] %vm554_vm1, %v947_v61  ;;  %v953_v15 = vadd.f32 %v951_v9, %v947_v61 }
 0x1cd   :  { %961 = vrot.lane.b32.xlu0 %v2407_v14, %s1976_s19  ;;  %v2412_v17 = vmul.f32 %v956_v50, %v953_v15 }
 0x1cf   :  { %963 = vrot.lane.b32.xlu1 %v2412_v17, %s1976_s19 }
 0x1d0   :  { %v974_v25 = vld [vmem:[#allocation7] sm:$0xff] }
 0x1d1   :  { %v976_v26 = vmul.f32 %v974_v25, %v2258_v18 }
 0x1d2   :  { %v975_v29 = vld [vmem:[#allocation7 + $0x8] sm:$0xff] }
 0x1d3   :  { %v980_v10 = vadd.f32 %v976_v26, %v2267_v30  ;;  %v977_v16 = vmul.f32 %v975_v29, %v2262_v19  ;;  %v1006_v19 = vld [vmem:[#allocation3 + $0x60] sm:$0xff] }
 0x1d5   :  { %v986_v38 = vadd.f32 %v984_v20, %v980_v10  ;;  %982 = vst.msk [vmem:[#allocation7] sm:$0xff] %vm554_vm1, %v980_v10  ;;  %v981_v21 = vadd.f32 %v977_v16, %v2271_v59  ;;  %v1012_v59 = vld [vmem:[#allocation2 + $0x60] sm:$0xff] }
 0x1d7   :  { %v2421_v43 = vmul.f32 %v989_v46, %v986_v38  ;;  %983 = vst.msk [vmem:[#allocation7 + $0x8] sm:$0xff] %vm554_vm1, %v981_v21  ;;  %v987_v24 = vadd.f32 %v985_v22, %v981_v21 }
 0x1d9   :  { %995 = vrot.lane.b32.xlu0 %v2421_v43, %s1976_s19  ;;  %v2426_v18 = vmul.f32 %v990_v27, %v987_v24 }
 0x1db   :  { %997 = vrot.lane.b32.xlu1 %v2426_v18, %s1976_s19 }
 0x1dc   :  { %v1008_v30 = vld [vmem:[#allocation7] sm:$0xff] }
 0x1dd   :  { %v1010_v49 = vmul.f32 %v1008_v30, %v1006_v19 }
 0x1de   :  { %v1009_v51 = vld [vmem:[#allocation7 + $0x8] sm:$0xff] }
 0x1df   :  { %v1014_v28 = vadd.f32 %v1012_v59, %v1010_v49  ;;  %v1011_v57 = vmul.f32 %v1009_v51, %v2218_v8 }
 0x1e1   :  { %v1020_v36 = vadd.f32 %v1018_v7, %v1014_v28  ;;  %1016 = vst.msk [vmem:[#allocation7] sm:$0xff] %vm554_vm1, %v1014_v28  ;;  %v1015_v53 = vadd.f32 %v1011_v57, %v2227_v45 }
 0x1e3   :  { %v2433_v0 = vmul.f32 %v1023_v41, %v1020_v36  ;;  %1017 = vst.msk [vmem:[#allocation7 + $0x8] sm:$0xff] %vm554_vm1, %v1015_v53  ;;  %v1021_v44 = vadd.f32 %v1019_v42, %v1015_v53 }
 0x1e5   :  { %1029 = vrot.lane.b32.xlu0 %v2433_v0, %s1976_s19  ;;  %v2438_v56 = vmul.f32 %v1024_v55, %v1021_v44 }
 0x1e7   :  { %1031 = vrot.lane.b32.xlu1 %v2438_v56, %s1976_s19 }
 0x1e8   :  { %v1042_v8 = vld [vmem:[#allocation7] sm:$0xff] }
 0x1e9   :  { %v1044_v3 = vmul.f32 %v1042_v8, %v2194_v39 }
 0x1ea   :  { %v1043_v45 = vld [vmem:[#allocation7 + $0x8] sm:$0xff] }
 0x1eb   :  { %v1048_v60 = vadd.f32 %v1044_v3, %v2199_v52  ;;  %v1045_v33 = vmul.f32 %v1043_v45, %v2201_v54 }
 0x1ed   :  { %v1054_v37 = vadd.f32 %v1052_v63, %v1048_v60  ;;  %1050 = vst.msk [vmem:[#allocation7] sm:$0xff] %vm554_vm1, %v1048_v60  ;;  %v1049_v47 = vadd.f32 %v1045_v33, %v2207_v5 }
 0x1ef   :  { %v2447_v6 = vmul.f32 %v1057_v4, %v1054_v37  ;;  %1051 = vst.msk [vmem:[#allocation7 + $0x8] sm:$0xff] %vm554_vm1, %v1049_v47  ;;  %v1055_v23 = vadd.f32 %v1053_v35, %v1049_v47 }
 0x1f1   :  { %1063 = vrot.lane.b32.xlu0 %v2447_v6, %s1976_s19  ;;  %v2452_v39 = vmul.f32 %v1058_v12, %v1055_v23 }
 0x1f3   :  { %1065 = vrot.lane.b32.xlu1 %v2452_v39, %s1976_s19 }
 0x20f   :  { %v827_v52 = vpop.permute.xlu0 %826 }
 0x210   :  { %v832_v54 = vadd.f32 %v827_v52, %v2343_v62 }
 0x211   :  { %v829_v5 = vpop.permute.xlu1 %828 }
 0x212   :  { %834 = vst.msk [vmem:[#allocation6] sm:$0xff] %vm104_vm0, %v832_v54  ;;  %v833_v13 = vadd.f32 %v829_v5, %v2348_v48 }
 0x214   :  { %835 = vst.msk [vmem:[#allocation6 + $0x8] sm:$0xff] %vm104_vm0, %v833_v13 }
 0x219   :  { %v2460_v40 = vld [vmem:[#allocation6] sm:$0xff] }
 0x21a   :  { %v1090_v61 = vsel %vm104_vm0, %v2460_v40, 0.0 }
 0x21b   :  { %v860_v2 = vpop.permute.xlu0 %859  ;;  %1091 = vadd.xlane.f32.xlu0 %v1090_v61  ;;  %v2464_v9 = vld [vmem:[#allocation6 + $0x8] sm:$0xff] }
 0x21c   :  { %v865_v15 = vadd.f32 %v860_v2, %v2353_v58  ;;  %v1093_v62 = vsel %vm104_vm0, %v2464_v9, 0.0 }
 0x21d   :  { %1094 = vadd.xlane.f32.xlu1 %v1093_v62  ;;  %v862_v50 = vpop.permute.xlu1 %861 }
 0x21e   :  { %868 = vst.msk [vmem:[#allocation6 + $0x10] sm:$0xff] %vm104_vm0, %v865_v15  ;;  %v866_v48 = vadd.f32 %v862_v50, %v2359_v1 }
 0x220   :  { %869 = vst.msk [vmem:[#allocation6 + $0x18] sm:$0xff] %vm104_vm0, %v866_v48 }
 0x225   :  { %v2472_v25 = vld [vmem:[#allocation6 + $0x10] sm:$0xff] }
 0x226   :  { %v1096_v26 = vsel %vm104_vm0, %v2472_v25, 0.0 }
 0x227   :  { %v894_v29 = vpop.permute.xlu0 %893  ;;  %1097 = vadd.xlane.f32.xlu0 %v1096_v26  ;;  %v2476_v10 = vld [vmem:[#allocation6 + $0x18] sm:$0xff] }
 0x228   :  { %v899_v58 = vadd.f32 %v894_v29, %v2373_v31  ;;  %v1099_v16 = vsel %vm104_vm0, %v2476_v10, 0.0 }
 0x229   :  { %v896_v20 = vpop.permute.xlu1 %895 }
 0x22a   :  { %902 = vst.msk [vmem:[#allocation6 + $0x20] sm:$0xff] %vm104_vm0, %v899_v58  ;;  %v900_v1 = vadd.f32 %v896_v20, %v2379_v32 }
 0x22b   :  { %1100 = vadd.xlane.f32.xlu0 %v1099_v16 }
 0x22c   :  { %903 = vst.msk [vmem:[#allocation6 + $0x28] sm:$0xff] %vm104_vm0, %v900_v1 }
 0x231   :  { %v2484_v38 = vld [vmem:[#allocation6 + $0x20] sm:$0xff] }
 0x232   :  { %v1102_v21 = vsel %vm104_vm0, %v2484_v38, 0.0 }
 0x233   :  { %1103 = vadd.xlane.f32.xlu1 %v1102_v21  ;;  %v928_v46 = vpop.permute.xlu0 %927  ;;  %v2488_v22 = vld [vmem:[#allocation6 + $0x28] sm:$0xff] }
 0x234   :  { %v933_v31 = vadd.f32 %v928_v46, %v2393_v11  ;;  %v1105_v24 = vsel %vm104_vm0, %v2488_v22, 0.0 }
 0x235   :  { %v930_v27 = vpop.permute.xlu1 %929  ;;  %1106 = vadd.xlane.f32.xlu0 %v1105_v24 }
 0x236   :  { %936 = vst.msk [vmem:[#allocation6 + $0x30] sm:$0xff] %vm104_vm0, %v933_v31  ;;  %v934_v32 = vadd.f32 %v930_v27, %v2398_v34 }
 0x238   :  { %937 = vst.msk [vmem:[#allocation6 + $0x38] sm:$0xff] %vm104_vm0, %v934_v32 }
 0x23d   :  { %v2496_v19 = vld [vmem:[#allocation6 + $0x30] sm:$0xff] }
 0x23e   :  { %v1108_v30 = vsel %vm104_vm0, %v2496_v19, 0.0 }
 0x23f   :  { %1109 = vadd.xlane.f32.xlu1 %v1108_v30  ;;  %v962_v49 = vpop.permute.xlu0 %961  ;;  %v2500_v59 = vld [vmem:[#allocation6 + $0x38] sm:$0xff] }
 0x240   :  { %v967_v11 = vadd.f32 %v962_v49, %v2407_v14  ;;  %v1111_v51 = vsel %vm104_vm0, %v2500_v59, 0.0 }
 0x241   :  { %v964_v28 = vpop.permute.xlu1 %963  ;;  %1112 = vadd.xlane.f32.xlu0 %v1111_v51 }
 0x242   :  { %970 = vst.msk [vmem:[#allocation6 + $0x40] sm:$0xff] %vm104_vm0, %v967_v11  ;;  %v968_v34 = vadd.f32 %v964_v28, %v2412_v17 }
 0x244   :  { %971 = vst.msk [vmem:[#allocation6 + $0x48] sm:$0xff] %vm104_vm0, %v968_v34 }
 0x249   :  { %v2508_v57 = vld [vmem:[#allocation6 + $0x40] sm:$0xff] }
 0x24a   :  { %v1114_v7 = vsel %vm104_vm0, %v2508_v57, 0.0 }
 0x24b   :  { %1115 = vadd.xlane.f32.xlu1 %v1114_v7  ;;  %v996_v36 = vpop.permute.xlu0 %995  ;;  %v2512_v53 = vld [vmem:[#allocation6 + $0x48] sm:$0xff] }
 0x24c   :  { %v1001_v14 = vadd.f32 %v996_v36, %v2421_v43  ;;  %v1117_v41 = vsel %vm104_vm0, %v2512_v53, 0.0  ;;  %v1348_v36 = vld [vmem:[#allocation13 + $0x18] sm:$0xff] }
 0x24d   :  { %v998_v42 = vpop.permute.xlu1 %997  ;;  %1118 = vadd.xlane.f32.xlu0 %v1117_v41  ;;  %1670 = vmatprep.subr.mxu1 %v1348_v36 }
 0x24e   :  { %1004 = vst.msk [vmem:[#allocation6 + $0x50] sm:$0xff] %vm104_vm0, %v1001_v14  ;;  %v1002_v17 = vadd.f32 %v998_v42, %v2426_v18  ;;  %v1347_v14 = vld [vmem:[#allocation13 + $0x10] sm:$0xff]  ;;  %1671 = vmatpush3.msra.mxu1 %v1348_v36 }
 0x24f   :  { %1672 = vmatprep.subr.mxu1 %v1347_v14 }
 0x250   :  { %1005 = vst.msk [vmem:[#allocation6 + $0x58] sm:$0xff] %vm104_vm0, %v1002_v17  ;;  %1673 = vmatpush3.msra.mxu1 %v1347_v14 }
 0x255   :  { %v2520_v44 = vld [vmem:[#allocation6 + $0x50] sm:$0xff] }
 0x256   :  { %v1120_v55 = vsel %vm104_vm0, %v2520_v44, 0.0 }
 0x257   :  { %1121 = vadd.xlane.f32.xlu1 %v1120_v55  ;;  %v1030_v8 = vpop.permute.xlu0 %1029  ;;  %v2524_v3 = vld [vmem:[#allocation6 + $0x58] sm:$0xff] }
 0x258   :  { %v1035_v43 = vadd.f32 %v1030_v8, %v2433_v0  ;;  %v1123_v45 = vsel %vm104_vm0, %v2524_v3, 0.0  ;;  %v1346_v8 = vld [vmem:[#allocation13 + $0x8] sm:$0xff] }
 0x259   :  { %v1032_v60 = vpop.permute.xlu1 %1031  ;;  %1124 = vadd.xlane.f32.xlu0 %v1123_v45  ;;  %1674 = vmatprep.subr.mxu1 %v1346_v8 }
 0x25a   :  { %1038 = vst.msk [vmem:[#allocation6 + $0x60] sm:$0xff] %vm104_vm0, %v1035_v43  ;;  %v1036_v18 = vadd.f32 %v1032_v60, %v2438_v56  ;;  %v1345_v43 = vld [vmem:[#allocation13] sm:$0xff]  ;;  %1675 = vmatpush3.msra.mxu1 %v1346_v8 }
 0x25b   :  { %1676 = vmatprep.subr.mxu1 %v1345_v43 }
 0x25c   :  { %1039 = vst.msk [vmem:[#allocation6 + $0x68] sm:$0xff] %vm104_vm0, %v1036_v18  ;;  %1677 = vmatpush3.msra.mxu1 %v1345_v43 }
 0x261   :  { %v2532_v33 = vld [vmem:[#allocation6 + $0x60] sm:$0xff] }
 0x262   :  { %v1126_v63 = vsel %vm104_vm0, %v2532_v33, 0.0 }
 0x263   :  { %1127 = vadd.xlane.f32.xlu1 %v1126_v63  ;;  %v1064_v37 = vpop.permute.xlu0 %1063  ;;  %v2536_v47 = vld [vmem:[#allocation6 + $0x68] sm:$0xff] }
 0x264   :  { %v1069_v0 = vadd.f32 %v1064_v37, %v2447_v6  ;;  %v1129_v4 = vsel %vm104_vm0, %v2536_v47, 0.0 }
 0x265   :  { %v1066_v35 = vpop.permute.xlu1 %1065  ;;  %1130 = vadd.xlane.f32.xlu0 %v1129_v4 }
 0x266   :  { %1072 = vst.msk [vmem:[#allocation6 + $0x70] sm:$0xff] %vm104_vm0, %v1069_v0  ;;  %v1070_v56 = vadd.f32 %v1066_v35, %v2452_v39 }
 0x268   :  { %1073 = vst.msk [vmem:[#allocation6 + $0x78] sm:$0xff] %vm104_vm0, %v1070_v56 }
 0x26d   :  { %v2544_v23 = vld [vmem:[#allocation6 + $0x70] sm:$0xff] }
 0x26e   :  { %v1132_v12 = vsel %vm104_vm0, %v2544_v23, 0.0 }
 0x26f   :  { %1133 = vadd.xlane.f32.xlu1 %v1132_v12  ;;  %v2548_v52 = vld [vmem:[#allocation6 + $0x78] sm:$0xff] }
 0x270   :  { %v1135_v6 = vsel %vm104_vm0, %v2548_v52, 0.0 }
 0x271   :  { %1136 = vadd.xlane.f32.xlu0 %v1135_v6 }
 0x2a4   :  { %v1092_v54 = vpop.xlane.xlu0 %1091 }
 0x2a5   :  { %v1139_v5 = vmul.f32 0.03125, %v1092_v54 }
 0x2a6   :  { %v1095_v13 = vpop.xlane.xlu1 %1094 }
 0x2a7   :  { %v2553_v61 = vsub.f32 %v2460_v40, %v1139_v5  ;;  %v1140_v39 = vmul.f32 0.03125, %v1095_v13 }
 0x2a9   :  { %v2556_v2 = vsub.f32 %v2464_v9, %v1140_v39  ;;  %v1171_v15 = vmul.f32 %v2553_v61, %v2553_v61 }
 0x2ab   :  { %v1187_v62 = vsel %vm104_vm0, %v1171_v15, 0.0  ;;  %v1172_v50 = vmul.f32 %v2556_v2, %v2556_v2 }
 0x2ac   :  { %1188 = vadd.xlane.f32.xlu1 %v1187_v62 }
 0x2ad   :  { %v1190_v48 = vsel %vm104_vm0, %v1172_v50, 0.0 }
 0x2ae   :  { %1191 = vadd.xlane.f32.xlu0 %v1190_v48 }
 0x2b0   :  { %v1098_v26 = vpop.xlane.xlu0 %1097 }
 0x2b1   :  { %v1141_v29 = vmul.f32 0.03125, %v1098_v26 }
 0x2b3   :  { %v2565_v40 = vsub.f32 %v2472_v25, %v1141_v29 }
 0x2b4   :  { %v1101_v58 = vpop.xlane.xlu0 %1100 }
 0x2b5   :  { %v1142_v9 = vmul.f32 0.03125, %v1101_v58  ;;  %v1173_v16 = vmul.f32 %v2565_v40, %v2565_v40 }
 0x2b7   :  { %v2570_v20 = vsub.f32 %v2476_v10, %v1142_v9  ;;  %v1193_v1 = vsel %vm104_vm0, %v1173_v16, 0.0 }
 0x2b8   :  { %1194 = vadd.xlane.f32.xlu1 %v1193_v1 }
 0x2b9   :  { %v1174_v21 = vmul.f32 %v2570_v20, %v2570_v20 }
 0x2bb   :  { %v1196_v46 = vsel %vm104_vm0, %v1174_v21, 0.0 }
 0x2bc   :  { %v1104_v31 = vpop.xlane.xlu1 %1103  ;;  %1197 = vadd.xlane.f32.xlu0 %v1196_v46 }
 0x2bd   :  { %v1143_v25 = vmul.f32 0.03125, %v1104_v31 }
 0x2be   :  { %v1107_v24 = vpop.xlane.xlu0 %1106 }
 0x2bf   :  { %v2577_v27 = vsub.f32 %v2484_v38, %v1143_v25  ;;  %v1144_v32 = vmul.f32 0.03125, %v1107_v24 }
 0x2c1   :  { %v2580_v30 = vsub.f32 %v2488_v22, %v1144_v32  ;;  %v1175_v10 = vmul.f32 %v2577_v27, %v2577_v27 }
 0x2c3   :  { %v1199_v49 = vsel %vm104_vm0, %v1175_v10, 0.0  ;;  %v1176_v11 = vmul.f32 %v2580_v30, %v2580_v30 }
 0x2c4   :  { %1200 = vadd.xlane.f32.xlu1 %v1199_v49 }
 0x2c5   :  { %v1202_v51 = vsel %vm104_vm0, %v1176_v11, 0.0 }
 0x2c6   :  { %1203 = vadd.xlane.f32.xlu0 %v1202_v51 }
 0x2c8   :  { %v1110_v28 = vpop.xlane.xlu1 %1109 }
 0x2c9   :  { %v1145_v34 = vmul.f32 0.03125, %v1110_v28 }
 0x2ca   :  { %v1113_v38 = vpop.xlane.xlu0 %1112 }
 0x2cb   :  { %v2589_v7 = vsub.f32 %v2496_v19, %v1145_v34  ;;  %v1146_v22 = vmul.f32 0.03125, %v1113_v38 }
 0x2cd   :  { %v2592_v41 = vsub.f32 %v2500_v59, %v1146_v22  ;;  %v1177_v42 = vmul.f32 %v2589_v7, %v2589_v7 }
 0x2cf   :  { %v1205_v17 = vsel %vm104_vm0, %v1177_v42, 0.0  ;;  %v1178_v55 = vmul.f32 %v2592_v41, %v2592_v41 }
 0x2d0   :  { %1206 = vadd.xlane.f32.xlu1 %v1205_v17 }
 0x2d1   :  { %v1208_v19 = vsel %vm104_vm0, %v1178_v55, 0.0  ;;  %v2651_v55 = vld [vmem:[%s2750_s3] ss:$0 sm:$0xff] }
 0x2d2   :  { %1209 = vadd.xlane.f32.xlu0 %v1208_v19 }
 0x2d4   :  { %v1116_v59 = vpop.xlane.xlu1 %1115 }
 0x2d5   :  { %v1147_v45 = vmul.f32 0.03125, %v1116_v59  ;;  %v2657_v59 = vld [vmem:[%s2751_s4] ss:$0 sm:$0xff] }
 0x2d6   :  { %v1119_v60 = vpop.xlane.xlu0 %1118 }
 0x2d7   :  { %v2601_v18 = vsub.f32 %v2508_v57, %v1147_v45  ;;  %v1148_v63 = vmul.f32 0.03125, %v1119_v60 }
 0x2d9   :  { %v2604_v37 = vsub.f32 %v2512_v53, %v1148_v63  ;;  %v1179_v0 = vmul.f32 %v2601_v18, %v2601_v18 }
 0x2db   :  { %v1211_v4 = vsel %vm104_vm0, %v1179_v0, 0.0  ;;  %v1180_v35 = vmul.f32 %v2604_v37, %v2604_v37 }
 0x2dc   :  { %1212 = vadd.xlane.f32.xlu1 %v1211_v4 }
 0x2dd   :  { %v1214_v56 = vsel %vm104_vm0, %v1180_v35, 0.0 }
 0x2de   :  { %1215 = vadd.xlane.f32.xlu0 %v1214_v56 }
 0x2e0   :  { %v1122_v12 = vpop.xlane.xlu1 %1121 }
 0x2e1   :  { %v1149_v6 = vmul.f32 0.03125, %v1122_v12 }
 0x2e2   :  { %v1125_v57 = vpop.xlane.xlu0 %1124 }
 0x2e3   :  { %v2613_v54 = vsub.f32 %v2520_v44, %v1149_v6  ;;  %v1150_v53 = vmul.f32 0.03125, %v1125_v57 }
 0x2e5   :  { %v2616_v5 = vsub.f32 %v2524_v3, %v1150_v53  ;;  %v1181_v13 = vmul.f32 %v2613_v54, %v2613_v54 }
 0x2e7   :  { %v1217_v39 = vsel %vm104_vm0, %v1181_v13, 0.0  ;;  %v1182_v15 = vmul.f32 %v2616_v5, %v2616_v5 }
 0x2e8   :  { %1218 = vadd.xlane.f32.xlu1 %v1217_v39 }
 0x2e9   :  { %v1220_v62 = vsel %vm104_vm0, %v1182_v15, 0.0 }
 0x2ea   :  { %1221 = vadd.xlane.f32.xlu0 %v1220_v62 }
 0x2ec   :  { %v1128_v50 = vpop.xlane.xlu1 %1127 }
 0x2ed   :  { %v1151_v48 = vmul.f32 0.03125, %v1128_v50 }
 0x2ee   :  { %v1131_v44 = vpop.xlane.xlu0 %1130 }
 0x2ef   :  { %v2625_v26 = vsub.f32 %v2532_v33, %v1151_v48  ;;  %v1152_v3 = vmul.f32 0.03125, %v1131_v44 }
 0x2f1   :  { %v2628_v29 = vsub.f32 %v2536_v47, %v1152_v3  ;;  %v1183_v58 = vmul.f32 %v2625_v26, %v2625_v26 }
 0x2f3   :  { %v1223_v9 = vsel %vm104_vm0, %v1183_v58, 0.0  ;;  %v1184_v16 = vmul.f32 %v2628_v29, %v2628_v29 }
 0x2f4   :  { %1224 = vadd.xlane.f32.xlu1 %v1223_v9 }
 0x2f5   :  { %v1226_v1 = vsel %vm104_vm0, %v1184_v16, 0.0 }
 0x2f6   :  { %1227 = vadd.xlane.f32.xlu0 %v1226_v1 }
 0x2f8   :  { %v1134_v21 = vpop.xlane.xlu1 %1133 }
 0x2f9   :  { %v1153_v46 = vmul.f32 0.03125, %v1134_v21 }
 0x2fa   :  { %v1137_v33 = vpop.xlane.xlu0 %1136 }
 0x2fb   :  { %v2637_v31 = vsub.f32 %v2544_v23, %v1153_v46  ;;  %v1154_v47 = vmul.f32 0.03125, %v1137_v33 }
 0x2fd   :  { %v2640_v25 = vsub.f32 %v2548_v52, %v1154_v47  ;;  %v1185_v24 = vmul.f32 %v2637_v31, %v2637_v31 }
 0x2ff   :  { %v1229_v32 = vsel %vm104_vm0, %v1185_v24, 0.0  ;;  %v1186_v10 = vmul.f32 %v2640_v25, %v2640_v25 }
 0x300   :  { %1230 = vadd.xlane.f32.xlu1 %v1229_v32 }
 0x301   :  { %v1232_v49 = vsel %vm104_vm0, %v1186_v10, 0.0 }
 0x302   :  { %1233 = vadd.xlane.f32.xlu0 %v1232_v49 }
 0x335   :  { %v1189_v11 = vpop.xlane.xlu1 %1188 }
 0x336   :  { %v1235_v51 = vmul.f32 0.03125, %v1189_v11 }
 0x337   :  { %v1192_v23 = vpop.xlane.xlu0 %1191 }
 0x338   :  { %v1251_v28 = vadd.f32 1e-05, %v1235_v51  ;;  %v1236_v34 = vmul.f32 0.03125, %v1192_v23 }
 0x33a   :  { %1849 = vrsqrt.f32 %v1251_v28  ;;  %v1252_v52 = vadd.f32 1e-05, %v1236_v34 }
 0x33c   :  { %1851 = vrsqrt.f32 %v1252_v52 }
 0x341   :  { %v1195_v38 = vpop.xlane.xlu1 %1194 }
 0x342   :  { %v1237_v22 = vmul.f32 0.03125, %v1195_v38 }
 0x344   :  { %v1253_v36 = vadd.f32 1e-05, %v1237_v22 }
 0x345   :  { %v1198_v14 = vpop.xlane.xlu0 %1197 }
 0x346   :  { %1853 = vrsqrt.f32 %v1253_v36  ;;  %v1238_v42 = vmul.f32 0.03125, %v1198_v14 }
 0x347   :  { %v1850_v17 = vpop.eup %1849 }
 0x348   :  { %v1254_v19 = vadd.f32 1e-05, %v1238_v42  ;;  %v1283_v8 = vmul.f32 %v1850_v17, %v2553_v61 }
 0x349   :  { %v1852_v43 = vpop.eup %1851 }
 0x34a   :  { %v1284_v45 = vmul.f32 %v1852_v43, %v2556_v2  ;;  %1855 = vrsqrt.f32 %v1254_v19  ;;  %v1306_v60 = vmul.f32 %v2651_v55, %v1283_v8 }
 0x34c   :  { %v1307_v63 = vmul.f32 %v2651_v55, %v1284_v45  ;;  %v1329_v0 = vadd.f32 %v2657_v59, %v1306_v60 }
 0x34d   :  { %v1201_v4 = vpop.xlane.xlu1 %1200 }
 0x34e   :  { %v1239_v35 = vmul.f32 0.03125, %v1201_v4  ;;  %1678 = vmatprep.mubr.msk.f32.mxu1 %vm104_vm0, %v1329_v0  ;;  %v1330_v61 = vadd.f32 %v2657_v59, %v1307_v63 }
 0x34f   :  { %v1204_v56 = vpop.xlane.xlu0 %1203 }
 0x350   :  { %v1255_v12 = vadd.f32 1e-05, %v1239_v35  ;;  %v1240_v6 = vmul.f32 0.03125, %v1204_v56  ;;  %1679 = vmatmul.mubr.msk.f32.vlgmr.msra.gmra.mxu1 %vm104_vm0, %v1330_v61 }
 0x352   :  { %1857 = vrsqrt.f32 %v1255_v12  ;;  %v1256_v2 = vadd.f32 1e-05, %v1240_v6 }
 0x353   :  { %v1854_v57 = vpop.eup %1853 }
 0x354   :  { %1859 = vrsqrt.f32 %v1256_v2  ;;  %v1285_v53 = vmul.f32 %v1854_v57, %v2565_v40 }
 0x356   :  { %v1308_v13 = vmul.f32 %v2651_v55, %v1285_v53 }
 0x357   :  { %v1856_v39 = vpop.eup %1855 }
 0x358   :  { %v1331_v15 = vadd.f32 %v2657_v59, %v1308_v13  ;;  %v1286_v62 = vmul.f32 %v1856_v39, %v2570_v20 }
 0x359   :  { %v1207_v50 = vpop.xlane.xlu1 %1206 }
 0x35a   :  { %v1241_v48 = vmul.f32 0.03125, %v1207_v50  ;;  %1681 = vmatprep.mubr.msk.f32.mxu1 %vm104_vm0, %v1331_v15  ;;  %v1309_v44 = vmul.f32 %v2651_v55, %v1286_v62 }
 0x35b   :  { %v1210_v3 = vpop.xlane.xlu0 %1209 }
 0x35c   :  { %v1257_v58 = vadd.f32 1e-05, %v1241_v48  ;;  %v1242_v9 = vmul.f32 0.03125, %v1210_v3  ;;  %v1332_v16 = vadd.f32 %v2657_v59, %v1309_v44 }
 0x35e   :  { %1861 = vrsqrt.f32 %v1257_v58  ;;  %v1258_v40 = vadd.f32 1e-05, %v1242_v9  ;;  %1682 = vmatmul.mubr.msk.f32.gmra.mxu1 %vm104_vm0, %v1332_v16 }
 0x35f   :  { %v1858_v1 = vpop.eup %1857 }
 0x360   :  { %1863 = vrsqrt.f32 %v1258_v40  ;;  %v1287_v21 = vmul.f32 %v1858_v1, %v2577_v27 }
 0x361   :  { %v1860_v20 = vpop.eup %1859 }
 0x362   :  { %v1310_v46 = vmul.f32 %v2651_v55, %v1287_v21  ;;  %v1288_v33 = vmul.f32 %v1860_v20, %v2580_v30 }
 0x364   :  { %v1333_v47 = vadd.f32 %v2657_v59, %v1310_v46  ;;  %v1311_v24 = vmul.f32 %v2651_v55, %v1288_v33 }
 0x365   :  { %v1213_v32 = vpop.xlane.xlu1 %1212 }
 0x366   :  { %v1243_v10 = vmul.f32 0.03125, %v1213_v32  ;;  %1684 = vmatprep.mubr.msk.f32.mxu1 %vm104_vm0, %v1333_v47  ;;  %v1334_v49 = vadd.f32 %v2657_v59, %v1311_v24 }
 0x367   :  { %v1216_v11 = vpop.xlane.xlu0 %1215 }
 0x368   :  { %v1259_v51 = vadd.f32 1e-05, %v1243_v10  ;;  %v1244_v23 = vmul.f32 0.03125, %v1216_v11  ;;  %1685 = vmatmul.mubr.msk.f32.gmra.mxu1 %vm104_vm0, %v1334_v49 }
 0x36a   :  { %1865 = vrsqrt.f32 %v1259_v51  ;;  %v1260_v27 = vadd.f32 1e-05, %v1244_v23  ;;  %v1633_v23 = vld [vmem:[%s2753_s6] ss:$0 sm:$0xff]  ;;  %s1977_s6 = smov [#allocation14]  }
 0x36b   :  { %v1862_v28 = vpop.eup %1861  ;;  %s1570_s24 = sshll.u32 %s1977_s6, 4  ;;  %s1571_s24 = int_to_ptr.vmem [resolvable:$true] %s1570_s24 }
 0x36c   :  { %1867 = vrsqrt.f32 %v1260_v27  ;;  %v1289_v30 = vmul.f32 %v1862_v28, %v2589_v7  ;;  %s1941_s25 = scalar_lea.vmem %s1571_s24, 2048  ;;  %p1946_p2 = scmp.lt.s32.totalorder %s1571_s24, %s1571_s24 }
 0x36d   :  { %v1864_v34 = vpop.eup %1863  ;;  %p1942_p1 = scmp.ne.s32.totalorder %s1571_s24, %s1941_s25  ;;  %p1947_p3 = scmp.lt.s32.totalorder %s1941_s25, %s1941_s25 }
 0x36e   :  { %v1312_v52 = vmul.f32 %v2651_v55, %v1289_v30  ;;  %v1290_v38 = vmul.f32 %v1864_v34, %v2592_v41 }
 0x36f   :  { %p1948_p4 = por %p1947_p3, %p1946_p2 }
 0x370   :  { %v1335_v22 = vadd.f32 %v2657_v59, %v1312_v52  ;;  %v1313_v36 = vmul.f32 %v2651_v55, %v1290_v38 }
 0x371   :  { %v1219_v14 = vpop.xlane.xlu1 %1218  ;;  %p1949_p5 = pnand %p1948_p4, %p1942_p1 }
 0x372   :  { %v1245_v42 = vmul.f32 0.03125, %v1219_v14  ;;  %1687 = vmatprep.mubr.msk.f32.mxu1 %vm104_vm0, %v1335_v22  ;;  %v1336_v17 = vadd.f32 %v2657_v59, %v1313_v36 }
 0x373   :  { %v1222_v19 = vpop.xlane.xlu0 %1221 }
 0x374   :  { %v1261_v8 = vadd.f32 1e-05, %v1245_v42  ;;  %v1246_v43 = vmul.f32 0.03125, %v1222_v19  ;;  %1688 = vmatmul.mubr.msk.f32.gmra.mxu1 %vm104_vm0, %v1336_v17 }
 0x376   :  { %1869 = vrsqrt.f32 %v1261_v8  ;;  %v1262_v7 = vadd.f32 1e-05, %v1246_v43 }
 0x377   :  { %v1866_v45 = vpop.eup %1865 }
 0x378   :  { %1871 = vrsqrt.f32 %v1262_v7  ;;  %v1291_v41 = vmul.f32 %v1866_v45, %v2601_v18 }
 0x379   :  { %v1868_v60 = vpop.eup %1867 }
 0x37a   :  { %v1314_v63 = vmul.f32 %v2651_v55, %v1291_v41  ;;  %v1292_v0 = vmul.f32 %v1868_v60, %v2604_v37 }
 0x37c   :  { %v1337_v4 = vadd.f32 %v2657_v59, %v1314_v63  ;;  %v1315_v35 = vmul.f32 %v2651_v55, %v1292_v0 }
 0x37d   :  { %v1225_v61 = vpop.xlane.xlu1 %1224 }
 0x37e   :  { %v1247_v56 = vmul.f32 0.03125, %v1225_v61  ;;  %1690 = vmatprep.mubr.msk.f32.mxu1 %vm104_vm0, %v1337_v4  ;;  %v1338_v12 = vadd.f32 %v2657_v59, %v1315_v35 }
 0x37f   :  { %v1228_v6 = vpop.xlane.xlu0 %1227 }
 0x380   :  { %v1263_v2 = vadd.f32 1e-05, %v1247_v56  ;;  %v1248_v57 = vmul.f32 0.03125, %v1228_v6  ;;  %1691 = vmatmul.mubr.msk.f32.gmra.mxu1 %vm104_vm0, %v1338_v12 }
 0x382   :  { %1873 = vrsqrt.f32 %v1263_v2  ;;  %v1264_v18 = vadd.f32 1e-05, %v1248_v57 }
 0x383   :  { %v1870_v53 = vpop.eup %1869 }
 0x384   :  { %1875 = vrsqrt.f32 %v1264_v18  ;;  %v1293_v37 = vmul.f32 %v1870_v53, %v2613_v54 }
 0x385   :  { %v1872_v13 = vpop.eup %1871 }
 0x386   :  { %v1316_v39 = vmul.f32 %v2651_v55, %v1293_v37  ;;  %v1294_v15 = vmul.f32 %v1872_v13, %v2616_v5 }
 0x388   :  { %v1339_v62 = vadd.f32 %v2657_v59, %v1316_v39  ;;  %v1317_v50 = vmul.f32 %v2651_v55, %v1294_v15 }
 0x389   :  { %v1231_v48 = vpop.xlane.xlu1 %1230 }
 0x38a   :  { %v1249_v44 = vmul.f32 0.03125, %v1231_v48  ;;  %1693 = vmatprep.mubr.msk.f32.mxu1 %vm104_vm0, %v1339_v62  ;;  %v1340_v3 = vadd.f32 %v2657_v59, %v1317_v50 }
 0x38b   :  { %v1234_v58 = vpop.xlane.xlu0 %1233 }
 0x38c   :  { %v1265_v9 = vadd.f32 1e-05, %v1249_v44  ;;  %v1250_v16 = vmul.f32 0.03125, %v1234_v58  ;;  %1694 = vmatmul.mubr.msk.f32.gmra.mxu1 %vm104_vm0, %v1340_v3 }
 0x38e   :  { %1877 = vrsqrt.f32 %v1265_v9  ;;  %v1266_v54 = vadd.f32 1e-05, %v1250_v16 }
 0x38f   :  { %v1874_v40 = vpop.eup %1873 }
 0x390   :  { %1879 = vrsqrt.f32 %v1266_v54  ;;  %v1295_v5 = vmul.f32 %v1874_v40, %v2625_v26 }
 0x391   :  { %v1876_v1 = vpop.eup %1875 }
 0x392   :  { %v1318_v21 = vmul.f32 %v2651_v55, %v1295_v5  ;;  %v1296_v20 = vmul.f32 %v1876_v1, %v2628_v29 }
 0x394   :  { %v1341_v46 = vadd.f32 %v2657_v59, %v1318_v21  ;;  %v1319_v33 = vmul.f32 %v2651_v55, %v1296_v20 }
 0x396   :  { %1696 = vmatprep.mubr.msk.f32.mxu1 %vm104_vm0, %v1341_v46  ;;  %v1342_v47 = vadd.f32 %v2657_v59, %v1319_v33 }
 0x398   :  { %1697 = vmatmul.mubr.msk.f32.gmra.mxu1 %vm104_vm0, %v1342_v47 }
 0x39b   :  { %v1878_v24 = vpop.eup %1877 }
 0x39c   :  { %v1297_v32 = vmul.f32 %v1878_v24, %v2637_v31 }
 0x39d   :  { %v1880_v10 = vpop.eup %1879 }
 0x39e   :  { %v1320_v26 = vmul.f32 %v2651_v55, %v1297_v32  ;;  %v1298_v49 = vmul.f32 %v1880_v10, %v2640_v25 }
 0x3a0   :  { %v1343_v29 = vadd.f32 %v2657_v59, %v1320_v26  ;;  %v1321_v11 = vmul.f32 %v2651_v55, %v1298_v49 }
 0x3a2   :  { %1699 = vmatprep.mubr.msk.f32.mxu1 %vm104_vm0, %v1343_v29  ;;  %v1344_v51 = vadd.f32 %v2657_v59, %v1321_v11 }
 0x3a4   :  { %1700 = vmatmul.mubr.msk.f32.gmra.mxu1 %vm104_vm0, %v1344_v51 }
 0x410   :  { %v1680_v31 = vpop.f32.mrf.mxu1 }
 0x411   :  { %v1476_v27 = vadd.f32 %v1680_v31, %v1633_v23 }
 0x412   :  { %v1470_v28 = vpop.f32.mrf.mxu1 }
 0x413   :  { %1550 = vst.msk [vmem:[#allocation14 + $0x8] sm:$0xff] %vm104_vm0, %v1476_v27  ;;  %v1471_v25 = vadd.f32 %v1633_v23, %v1470_v28 }
 0x415   :  { %1549 = vst.msk [vmem:[#allocation14] sm:$0xff] %vm104_vm0, %v1471_v25 }
 0x41e   :  { %v1683_v30 = vpop.f32.mrf.mxu1 }
 0x41f   :  { %v1486_v55 = vadd.f32 %v1683_v30, %v1633_v23 }
 0x420   :  { %v1480_v34 = vpop.f32.mrf.mxu1 }
 0x421   :  { %1552 = vst.msk [vmem:[#allocation14 + $0x18] sm:$0xff] %vm104_vm0, %v1486_v55  ;;  %v1481_v59 = vadd.f32 %v1633_v23, %v1480_v34 }
 0x423   :  { %1551 = vst.msk [vmem:[#allocation14 + $0x10] sm:$0xff] %vm104_vm0, %v1481_v59 }
 0x428   :  { %v1686_v52 = vpop.f32.mrf.mxu1 }
 0x429   :  { %v1496_v38 = vadd.f32 %v1686_v52, %v1633_v23 }
 0x42a   :  { %v1490_v22 = vpop.f32.mrf.mxu1 }
 0x42b   :  { %1554 = vst.msk [vmem:[#allocation14 + $0x28] sm:$0xff] %vm104_vm0, %v1496_v38  ;;  %v1491_v36 = vadd.f32 %v1633_v23, %v1490_v22 }
 0x42d   :  { %1553 = vst.msk [vmem:[#allocation14 + $0x20] sm:$0xff] %vm104_vm0, %v1491_v36 }
 0x434   :  { %v1689_v14 = vpop.f32.mrf.mxu1 }
 0x435   :  { %v1506_v42 = vadd.f32 %v1689_v14, %v1633_v23 }
 0x436   :  { %v1500_v17 = vpop.f32.mrf.mxu1 }
 0x437   :  { %1556 = vst.msk [vmem:[#allocation14 + $0x38] sm:$0xff] %vm104_vm0, %v1506_v42  ;;  %v1501_v19 = vadd.f32 %v1633_v23, %v1500_v17 }
 0x439   :  { %1555 = vst.msk [vmem:[#allocation14 + $0x30] sm:$0xff] %vm104_vm0, %v1501_v19 }
 0x440   :  { %v1692_v8 = vpop.f32.mrf.mxu1 }
 0x441   :  { %v1516_v43 = vadd.f32 %v1692_v8, %v1633_v23 }
 0x442   :  { %v1510_v7 = vpop.f32.mrf.mxu1 }
 0x443   :  { %1558 = vst.msk [vmem:[#allocation14 + $0x48] sm:$0xff] %vm104_vm0, %v1516_v43  ;;  %v1511_v45 = vadd.f32 %v1633_v23, %v1510_v7 }
 0x445   :  { %1557 = vst.msk [vmem:[#allocation14 + $0x40] sm:$0xff] %vm104_vm0, %v1511_v45 }
 0x44c   :  { %v1695_v41 = vpop.f32.mrf.mxu1 }
 0x44d   :  { %v1526_v60 = vadd.f32 %v1695_v41, %v1633_v23 }
 0x44e   :  { %v1520_v63 = vpop.f32.mrf.mxu1 }
 0x44f   :  { %1560 = vst.msk [vmem:[#allocation14 + $0x58] sm:$0xff] %vm104_vm0, %v1526_v60  ;;  %v1521_v0 = vadd.f32 %v1633_v23, %v1520_v63 }
 0x451   :  { %1559 = vst.msk [vmem:[#allocation14 + $0x50] sm:$0xff] %vm104_vm0, %v1521_v0 }
 0x458   :  { %v1698_v4 = vpop.f32.mrf.mxu1 }
 0x459   :  { %v1536_v35 = vadd.f32 %v1698_v4, %v1633_v23 }
 0x45a   :  { %v1530_v61 = vpop.f32.mrf.mxu1 }
 0x45b   :  { %1562 = vst.msk [vmem:[#allocation14 + $0x68] sm:$0xff] %vm104_vm0, %v1536_v35  ;;  %v1531_v56 = vadd.f32 %v1633_v23, %v1530_v61 }
 0x45d   :  { %1561 = vst.msk [vmem:[#allocation14 + $0x60] sm:$0xff] %vm104_vm0, %v1531_v56 }
 0x464   :  { %v1701_v12 = vpop.f32.mrf.mxu1 }
 0x465   :  { %v1546_v6 = vadd.f32 %v1701_v12, %v1633_v23 }
 0x466   :  { %v1540_v2 = vpop.f32.mrf.mxu1 }
 0x467   :  { %1564 = vst.msk [vmem:[#allocation14 + $0x78] sm:$0xff] %vm104_vm0, %v1546_v6  ;;  %v1541_v57 = vadd.f32 %v1633_v23, %v1540_v2 }
 0x469   :  { %1563 = vst.msk [vmem:[#allocation14 + $0x70] sm:$0xff] %vm104_vm0, %v1541_v57 }
 0x46a   :  { %1952 = shalt.err (!%p1949_p5)
}
 0x46b   :  { %1576 = dma.vmem_to_hbm [thread:$0]  %s1571_s24, 2048, %s2754_s7, [#allocation10], %s1971_s11, %s1971_s11, %s1972_s12  }
 0x46c   :  { %1965 = dma.done.wait [#allocation10], 2048  }
 0x46d   :  { %1966 = vsyncadd [#allocation10], 4294965248 }
 0x46e   :  { %1580 = vsyncpa [#allocation9], 1 }
 0x46f   :  { %1581 = vsyncpa [#allocation12], 1 }
 0x470   :  { %1582 = vsyncpa [#allocation10], 1 }

</bundles_post_ra>
